<compile_context>
chip_gen: v7x
topology: tpu7x:2x2x1
jax: 0.10.0
libtpu: 0.0.40
codegen_flags: <defaults>
</compile_context>

<pallas_src>
import math

import jax
import jax.numpy as jnp
from jax.experimental import pallas as pl
from jax.experimental.pallas import tpu as pltpu

_IN_EPS = 1e-5     # torch.nn.InstanceNorm2d default eps
_L2_EPS = 1e-12    # torch F.normalize default eps


# ---------------------------------------------------------------------------
# Kernel 1: fused conv block
#   (im2col) matmul + bias + ReLU + InstanceNorm  [+ global average pool]
# One grid step per batch sample (the InstanceNorm statistics are per sample).
# ---------------------------------------------------------------------------
def _conv_block_kernel(pool):
    def kernel(col_ref, w_ref, b_ref, o_ref):
        a = col_ref[0]                                            # (M, K) bf16
        acc = jnp.dot(a, w_ref[...], preferred_element_type=jnp.float32)
        acc = acc + b_ref[...]                                    # (1, Cout)
        acc = jnp.maximum(acc, 0.0)                               # Conv2dBlock ReLU
        # InstanceNorm2d (no affine): stats over the spatial rows.
        mean = jnp.mean(acc, axis=0, keepdims=True)
        cen = acc - mean
        var = jnp.mean(cen * cen, axis=0, keepdims=True)
        y = cen * jax.lax.rsqrt(var + _IN_EPS)
        if pool:
            o_ref[0] = jnp.mean(y, axis=0, keepdims=True)         # spatial mean
        else:
            o_ref[0] = y
    return kernel


def _im2col(x_nhwc, k, stride, pad):
    """(N,H,W,C) -> (N, Ho*Wo, k*k*C) with (dy, dx, cin) minor ordering."""
    N, H, W, C = x_nhwc.shape
    xp = jnp.pad(x_nhwc, ((0, 0), (pad, pad), (pad, pad), (0, 0)))
    Ho = (H + 2 * pad - k) // stride + 1
    Wo = (W + 2 * pad - k) // stride + 1
    cols = []
    for dy in range(k):
        for dx in range(k):
            cols.append(xp[:, dy:dy + Ho * stride:stride,
                           dx:dx + Wo * stride:stride, :])
    col = jnp.concatenate(cols, axis=-1)                          # (N,Ho,Wo,k*k*C)
    return col.reshape(N, Ho * Wo, k * k * C), Ho, Wo


def conv_block(x_nhwc, w2d, b2d, *, stride, pool=False, k=3, pad=1):
    """Fused Conv2dBlock(3x3, bias, ReLU) + InstanceNorm2d [+ spatial mean]."""
    N = x_nhwc.shape[0]
    col, Ho, Wo = _im2col(x_nhwc, k, stride, pad)
    col = col.astype(jnp.bfloat16)                                # MXU-native input
    M, K = col.shape[1], col.shape[2]
    Cout = w2d.shape[1]
    Mo = 1 if pool else M

    out = pl.pallas_call(
        _conv_block_kernel(pool),
        out_shape=jax.ShapeDtypeStruct((N, Mo, Cout), jnp.float32),
        grid=(N,),
        in_specs=[
            pl.BlockSpec((1, M, K), lambda i: (i, 0, 0)),
            pl.BlockSpec((K, Cout), lambda i: (0, 0)),
            pl.BlockSpec((1, Cout), lambda i: (0, 0)),
        ],
        out_specs=pl.BlockSpec((1, Mo, Cout), lambda i: (i, 0, 0)),
        compiler_params=pltpu.CompilerParams(
            dimension_semantics=("parallel",)),
    )(col, w2d, b2d)

    if pool:
        return out.reshape(N, Cout)                               # (N, Cout)
    return out.reshape(N, Ho, Wo, Cout)                           # NHWC


# ---------------------------------------------------------------------------
# Kernel 2: fused linear head
#   Linear+ReLU -> Linear+ReLU -> Linear -> l2-normalize, one pallas_call.
# Everything (M=N_batch rows, K,N <= 32) trivially fits in VMEM.
# ---------------------------------------------------------------------------
def _head_kernel(x_ref, w0_ref, b0_ref, w1_ref, b1_ref, w2_ref, b2_ref, o_ref):
    h = x_ref[...]
    h = jnp.maximum(
        jnp.dot(h, w0_ref[...], preferred_element_type=jnp.float32) + b0_ref[...],
        0.0)
    h = jnp.maximum(
        jnp.dot(h, w1_ref[...], preferred_element_type=jnp.float32) + b1_ref[...],
        0.0)
    h = jnp.dot(h, w2_ref[...], preferred_element_type=jnp.float32) + b2_ref[...]
    # l2_normalize along dim=1 (F.normalize clamps the norm, not the sq-sum)
    norm = jnp.sqrt(jnp.sum(h * h, axis=1, keepdims=True))
    o_ref[...] = h / jnp.maximum(norm, _L2_EPS)


def linear_head(pooled, p):
    N = pooled.shape[0]
    style_dim = p["lin2_w"].shape[1]
    return pl.pallas_call(
        _head_kernel,
        out_shape=jax.ShapeDtypeStruct((N, style_dim), jnp.float32),
    )(pooled, p["lin0_w"], p["lin0_b"], p["lin1_w"], p["lin1_b"],
      p["lin2_w"], p["lin2_b"])


# ---------------------------------------------------------------------------
# Style_Encoder forward.
# ---------------------------------------------------------------------------
def style_encoder_forward(x_nchw, params):
    x = jnp.transpose(x_nchw, (0, 2, 3, 1))                       # NCHW -> NHWC
    convs = params["convs"]
    n_blocks = len(convs)
    for i, (w2d, b2d) in enumerate(convs):
        stride = 1 if i == 0 else 2
        last = (i == n_blocks - 1)
        x = conv_block(x, w2d, b2d, stride=stride, pool=last)
    # x is now the spatially pooled features (N, max_channels)
    return linear_head(x, params)                                 # (N, style_dim)


# ---------------------------------------------------------------------------
# Deterministic synthetic parameters (pre-laid-out for the kernels).
# ---------------------------------------------------------------------------
def _channel_numbers(min_channels, max_channels, in_channels):
    # mirrors: [in_ch] + 2 ** arange(log2(min_ch), log2(max_ch + 1))
    chans = [in_channels]
    v = math.log2(min_channels)
    stop = math.log2(max_channels + 1)
    while v < stop:
        chans.append(2 ** int(round(v)))
        v += 1.0
    return chans


def init_params(key, *, min_channels=8, max_channels=32, in_channels=3,
                style_dim=8, k=3):
    ch = _channel_numbers(min_channels, max_channels, in_channels)
    n_conv = len(ch) - 1
    keys = iter(jax.random.split(key, 2 * n_conv + 8))

    def conv_p(cin, cout):
        w = jax.random.normal(next(keys), (k, k, cin, cout), jnp.float32)
        w = w * (float(k * k * cin) ** -0.5)
        b = 0.01 * jax.random.normal(next(keys), (cout,), jnp.float32)
        # pre-layout once: (k*k*cin, cout) bf16 matmul operand, (1,cout) f32 bias
        return (w.reshape(k * k * cin, cout).astype(jnp.bfloat16),
                b.reshape(1, cout))

    def lin_p(cin, cout):
        w = jax.random.normal(next(keys), (cin, cout), jnp.float32)
        w = w * (float(cin) ** -0.5)
        b = 0.01 * jax.random.normal(next(keys), (cout,), jnp.float32)
        return w, b.reshape(1, cout)

    params = {"convs": [conv_p(ch[i], ch[i + 1]) for i in range(n_conv)]}
    params["lin0_w"], params["lin0_b"] = lin_p(max_channels, max_channels)
    params["lin1_w"], params["lin1_b"] = lin_p(max_channels, max_channels)
    params["lin2_w"], params["lin2_b"] = lin_p(max_channels, style_dim)
    return params


# ---------------------------------------------------------------------------
if __name__ == "__main__":
    key = jax.random.PRNGKey(0)
    kx, kp = jax.random.split(key)

    batch, in_channels, size, style_dim = 2, 3, 16, 8
    x = jax.random.normal(kx, (batch, in_channels, size, size), jnp.float32)
    params = init_params(kp, min_channels=8, max_channels=32,
                         in_channels=in_channels, style_dim=style_dim)

    fwd = jax.jit(style_encoder_forward)
    out = jax.block_until_ready(fwd(x, params))

    assert out.shape == (batch, style_dim), out.shape
    assert bool(jnp.all(jnp.isfinite(out)))
    norms = jnp.sqrt(jnp.sum(out * out, axis=1))
    assert bool(jnp.all(jnp.abs(norms - 1.0) < 1e-3)), norms   # l2-normalized
    print("KERNEL_OK")
</pallas_src>

<mosaic_0001>
module attributes {stable_mosaic.version = 11 : i64} {
  func.func @kernel(%arg0: i32, %arg1: memref<1x256x27xbf16, #tpu.memory_space<vmem>>, %arg2: memref<27x8xbf16, #tpu.memory_space<vmem>>, %arg3: memref<1x8xf32, #tpu.memory_space<vmem>>, %arg4: memref<1x256x8xf32, #tpu.memory_space<vmem>>) attributes {dimension_semantics = [#tpu.dimension_semantics<parallel>], iteration_bounds = array<i64: 2>, scalar_prefetch = 0 : i64, scratch_operands = 0 : i64, tpu.core_type = #tpu.core_type<tc>, window_params = [{transform_indices = @transform_0, window_bounds = array<i64: 1, 256, 27>}, {pipeline_mode = #tpu.pipeline_mode<synchronous>, transform_indices = @transform_1, window_bounds = array<i64: 27, 8>}, {pipeline_mode = #tpu.pipeline_mode<synchronous>, transform_indices = @transform_2, window_bounds = array<i64: 1, 8>}, {transform_indices = @transform_3, window_bounds = array<i64: 1, 256, 8>}]} {
    %c0 = arith.constant 0 : index
    %c0_0 = arith.constant 0 : index
    %c0_1 = arith.constant 0 : index
    %0 = vector.load %arg1[%c0, %c0_0, %c0_1] : memref<1x256x27xbf16, #tpu.memory_space<vmem>>, vector<1x256x27xbf16>
    %1 = vector.shape_cast %0 : vector<1x256x27xbf16> to vector<256x27xbf16>
    %c0_2 = arith.constant 0 : index
    %c0_3 = arith.constant 0 : index
    %2 = vector.load %arg2[%c0_2, %c0_3] : memref<27x8xbf16, #tpu.memory_space<vmem>>, vector<27x8xbf16>
    %cst = arith.constant dense<0.000000e+00> : vector<256x8xf32>
    %3 = tpu.matmul %1, %2, %cst {dimension_numbers = #tpu.dot_dimension_numbers<[1], [0], [0], [1], [0, 0, 1, 1], [], []>} : vector<256x27xbf16>, vector<27x8xbf16>, vector<256x8xf32> -> vector<256x8xf32>
    %c0_4 = arith.constant 0 : index
    %c0_5 = arith.constant 0 : index
    %4 = vector.load %arg3[%c0_4, %c0_5] : memref<1x8xf32, #tpu.memory_space<vmem>>, vector<1x8xf32>
    %5 = vector.broadcast %4 : vector<1x8xf32> to vector<256x8xf32>
    %6 = arith.addf %3, %5 : vector<256x8xf32>
    %cst_6 = arith.constant 0.000000e+00 : f32
    %7 = vector.broadcast %cst_6 : f32 to vector<256x8xf32>
    %8 = arith.maximumf %6, %7 : vector<256x8xf32>
    %cst_7 = arith.constant dense<0.000000e+00> : vector<8xf32>
    %9 = vector.multi_reduction <add>, %8, %cst_7 [0] : vector<256x8xf32> to vector<8xf32>
    %10 = vector.shape_cast %9 : vector<8xf32> to vector<1x8xf32>
    %cst_8 = arith.constant 2.560000e+02 : f32
    %11 = vector.broadcast %cst_8 : f32 to vector<1x8xf32>
    %12 = arith.divf %10, %11 : vector<1x8xf32>
    %13 = vector.broadcast %12 : vector<1x8xf32> to vector<256x8xf32>
    %14 = arith.subf %8, %13 : vector<256x8xf32>
    %15 = arith.mulf %14, %14 : vector<256x8xf32>
    %cst_9 = arith.constant dense<0.000000e+00> : vector<8xf32>
    %16 = vector.multi_reduction <add>, %15, %cst_9 [0] : vector<256x8xf32> to vector<8xf32>
    %17 = vector.shape_cast %16 : vector<8xf32> to vector<1x8xf32>
    %cst_10 = arith.constant 2.560000e+02 : f32
    %18 = vector.broadcast %cst_10 : f32 to vector<1x8xf32>
    %19 = arith.divf %17, %18 : vector<1x8xf32>
    %cst_11 = arith.constant 9.99999974E-6 : f32
    %20 = vector.broadcast %cst_11 : f32 to vector<1x8xf32>
    %21 = arith.addf %19, %20 : vector<1x8xf32>
    %22 = math.rsqrt %21 : vector<1x8xf32>
    %23 = vector.broadcast %22 : vector<1x8xf32> to vector<256x8xf32>
    %24 = arith.mulf %14, %23 : vector<256x8xf32>
    %c0_12 = arith.constant 0 : index
    %c0_13 = arith.constant 0 : index
    %c0_14 = arith.constant 0 : index
    %25 = vector.load %arg4[%c0_12, %c0_13, %c0_14] : memref<1x256x8xf32, #tpu.memory_space<vmem>>, vector<1x256x8xf32>
    %26 = vector.shape_cast %25 : vector<1x256x8xf32> to vector<256x8xf32>
    %27 = vector.shape_cast %24 : vector<256x8xf32> to vector<1x256x8xf32>
    tpu.vector_store %arg4[%c0_12, %c0_13, %c0_14], %27 {strides = array<i32>} : memref<1x256x8xf32, #tpu.memory_space<vmem>>, vector<1x256x8xf32>,
    return
  }
  func.func @transform_0(%arg0: i32) -> (i32, i32, i32) {
    %c0_i32 = arith.constant 0 : i32
    %c0_i32_0 = arith.constant 0 : i32
    %c0_i32_1 = arith.constant 0 : i32
    return %arg0, %c0_i32, %c0_i32_0 : i32, i32, i32
  }
  func.func @transform_1(%arg0: i32) -> (i32, i32) {
    %c0_i32 = arith.constant 0 : i32
    %c0_i32_0 = arith.constant 0 : i32
    %c0_i32_1 = arith.constant 0 : i32
    return %c0_i32, %c0_i32_0 : i32, i32
  }
  func.func @transform_2(%arg0: i32) -> (i32, i32) {
    %c0_i32 = arith.constant 0 : i32
    %c0_i32_0 = arith.constant 0 : i32
    %c0_i32_1 = arith.constant 0 : i32
    return %c0_i32, %c0_i32_0 : i32, i32
  }
  func.func @transform_3(%arg0: i32) -> (i32, i32, i32) {
    %c0_i32 = arith.constant 0 : i32
    %c0_i32_0 = arith.constant 0 : i32
    %c0_i32_1 = arith.constant 0 : i32
    return %arg0, %c0_i32, %c0_i32_0 : i32, i32, i32
  }
}

module attributes {stable_mosaic.version = 11 : i64} {
  func.func @kernel(%arg0: i32, %arg1: memref<1x64x72xbf16, #tpu.memory_space<vmem>>, %arg2: memref<72x16xbf16, #tpu.memory_space<vmem>>, %arg3: memref<1x16xf32, #tpu.memory_space<vmem>>, %arg4: memref<1x64x16xf32, #tpu.memory_space<vmem>>) attributes {dimension_semantics = [#tpu.dimension_semantics<parallel>], iteration_bounds = array<i64: 2>, scalar_prefetch = 0 : i64, scratch_operands = 0 : i64, tpu.core_type = #tpu.core_type<tc>, window_params = [{transform_indices = @transform_0, window_bounds = array<i64: 1, 64, 72>}, {pipeline_mode = #tpu.pipeline_mode<synchronous>, transform_indices = @transform_1, window_bounds = array<i64: 72, 16>}, {pipeline_mode = #tpu.pipeline_mode<synchronous>, transform_indices = @transform_2, window_bounds = array<i64: 1, 16>}, {transform_indices = @transform_3, window_bounds = array<i64: 1, 64, 16>}]} {
    %c0 = arith.constant 0 : index
    %c0_0 = arith.constant 0 : index
    %c0_1 = arith.constant 0 : index
    %0 = vector.load %arg1[%c0, %c0_0, %c0_1] : memref<1x64x72xbf16, #tpu.memory_space<vmem>>, vector<1x64x72xbf16>
    %1 = vector.shape_cast %0 : vector<1x64x72xbf16> to vector<64x72xbf16>
    %c0_2 = arith.constant 0 : index
    %c0_3 = arith.constant 0 : index
    %2 = vector.load %arg2[%c0_2, %c0_3] : memref<72x16xbf16, #tpu.memory_space<vmem>>, vector<72x16xbf16>
    %cst = arith.constant dense<0.000000e+00> : vector<64x16xf32>
    %3 = tpu.matmul %1, %2, %cst {dimension_numbers = #tpu.dot_dimension_numbers<[1], [0], [0], [1], [0, 0, 1, 1], [], []>} : vector<64x72xbf16>, vector<72x16xbf16>, vector<64x16xf32> -> vector<64x16xf32>
    %c0_4 = arith.constant 0 : index
    %c0_5 = arith.constant 0 : index
    %4 = vector.load %arg3[%c0_4, %c0_5] : memref<1x16xf32, #tpu.memory_space<vmem>>, vector<1x16xf32>
    %5 = vector.broadcast %4 : vector<1x16xf32> to vector<64x16xf32>
    %6 = arith.addf %3, %5 : vector<64x16xf32>
    %cst_6 = arith.constant 0.000000e+00 : f32
    %7 = vector.broadcast %cst_6 : f32 to vector<64x16xf32>
    %8 = arith.maximumf %6, %7 : vector<64x16xf32>
    %cst_7 = arith.constant dense<0.000000e+00> : vector<16xf32>
    %9 = vector.multi_reduction <add>, %8, %cst_7 [0] : vector<64x16xf32> to vector<16xf32>
    %10 = vector.shape_cast %9 : vector<16xf32> to vector<1x16xf32>
    %cst_8 = arith.constant 6.400000e+01 : f32
    %11 = vector.broadcast %cst_8 : f32 to vector<1x16xf32>
    %12 = arith.divf %10, %11 : vector<1x16xf32>
    %13 = vector.broadcast %12 : vector<1x16xf32> to vector<64x16xf32>
    %14 = arith.subf %8, %13 : vector<64x16xf32>
    %15 = arith.mulf %14, %14 : vector<64x16xf32>
    %cst_9 = arith.constant dense<0.000000e+00> : vector<16xf32>
    %16 = vector.multi_reduction <add>, %15, %cst_9 [0] : vector<64x16xf32> to vector<16xf32>
    %17 = vector.shape_cast %16 : vector<16xf32> to vector<1x16xf32>
    %cst_10 = arith.constant 6.400000e+01 : f32
    %18 = vector.broadcast %cst_10 : f32 to vector<1x16xf32>
    %19 = arith.divf %17, %18 : vector<1x16xf32>
    %cst_11 = arith.constant 9.99999974E-6 : f32
    %20 = vector.broadcast %cst_11 : f32 to vector<1x16xf32>
    %21 = arith.addf %19, %20 : vector<1x16xf32>
    %22 = math.rsqrt %21 : vector<1x16xf32>
    %23 = vector.broadcast %22 : vector<1x16xf32> to vector<64x16xf32>
    %24 = arith.mulf %14, %23 : vector<64x16xf32>
    %c0_12 = arith.constant 0 : index
    %c0_13 = arith.constant 0 : index
    %c0_14 = arith.constant 0 : index
    %25 = vector.load %arg4[%c0_12, %c0_13, %c0_14] : memref<1x64x16xf32, #tpu.memory_space<vmem>>, vector<1x64x16xf32>
    %26 = vector.shape_cast %25 : vector<1x64x16xf32> to vector<64x16xf32>
    %27 = vector.shape_cast %24 : vector<64x16xf32> to vector<1x64x16xf32>
    tpu.vector_store %arg4[%c0_12, %c0_13, %c0_14], %27 {strides = array<i32>} : memref<1x64x16xf32, #tpu.memory_space<vmem>>, vector<1x64x16xf32>,
    return
  }
  func.func @transform_0(%arg0: i32) -> (i32, i32, i32) {
    %c0_i32 = arith.constant 0 : i32
    %c0_i32_0 = arith.constant 0 : i32
    %c0_i32_1 = arith.constant 0 : i32
    return %arg0, %c0_i32, %c0_i32_0 : i32, i32, i32
  }
  func.func @transform_1(%arg0: i32) -> (i32, i32) {
    %c0_i32 = arith.constant 0 : i32
    %c0_i32_0 = arith.constant 0 : i32
    %c0_i32_1 = arith.constant 0 : i32
    return %c0_i32, %c0_i32_0 : i32, i32
  }
  func.func @transform_2(%arg0: i32) -> (i32, i32) {
    %c0_i32 = arith.constant 0 : i32
    %c0_i32_0 = arith.constant 0 : i32
    %c0_i32_1 = arith.constant 0 : i32
    return %c0_i32, %c0_i32_0 : i32, i32
  }
  func.func @transform_3(%arg0: i32) -> (i32, i32, i32) {
    %c0_i32 = arith.constant 0 : i32
    %c0_i32_0 = arith.constant 0 : i32
    %c0_i32_1 = arith.constant 0 : i32
    return %arg0, %c0_i32, %c0_i32_0 : i32, i32, i32
  }
}

module attributes {stable_mosaic.version = 11 : i64} {
  func.func @kernel(%arg0: i32, %arg1: memref<1x16x144xbf16, #tpu.memory_space<vmem>>, %arg2: memref<144x32xbf16, #tpu.memory_space<vmem>>, %arg3: memref<1x32xf32, #tpu.memory_space<vmem>>, %arg4: memref<1x1x32xf32, #tpu.memory_space<vmem>>) attributes {dimension_semantics = [#tpu.dimension_semantics<parallel>], iteration_bounds = array<i64: 2>, scalar_prefetch = 0 : i64, scratch_operands = 0 : i64, tpu.core_type = #tpu.core_type<tc>, window_params = [{transform_indices = @transform_0, window_bounds = array<i64: 1, 16, 144>}, {pipeline_mode = #tpu.pipeline_mode<synchronous>, transform_indices = @transform_1, window_bounds = array<i64: 144, 32>}, {pipeline_mode = #tpu.pipeline_mode<synchronous>, transform_indices = @transform_2, window_bounds = array<i64: 1, 32>}, {transform_indices = @transform_3, window_bounds = array<i64: 1, 1, 32>}]} {
    %c0 = arith.constant 0 : index
    %c0_0 = arith.constant 0 : index
    %c0_1 = arith.constant 0 : index
    %0 = vector.load %arg1[%c0, %c0_0, %c0_1] : memref<1x16x144xbf16, #tpu.memory_space<vmem>>, vector<1x16x144xbf16>
    %1 = vector.shape_cast %0 : vector<1x16x144xbf16> to vector<16x144xbf16>
    %c0_2 = arith.constant 0 : index
    %c0_3 = arith.constant 0 : index
    %2 = vector.load %arg2[%c0_2, %c0_3] : memref<144x32xbf16, #tpu.memory_space<vmem>>, vector<144x32xbf16>
    %cst = arith.constant dense<0.000000e+00> : vector<16x32xf32>
    %3 = tpu.matmul %1, %2, %cst {dimension_numbers = #tpu.dot_dimension_numbers<[1], [0], [0], [1], [0, 0, 1, 1], [], []>} : vector<16x144xbf16>, vector<144x32xbf16>, vector<16x32xf32> -> vector<16x32xf32>
    %c0_4 = arith.constant 0 : index
    %c0_5 = arith.constant 0 : index
    %4 = vector.load %arg3[%c0_4, %c0_5] : memref<1x32xf32, #tpu.memory_space<vmem>>, vector<1x32xf32>
    %5 = vector.broadcast %4 : vector<1x32xf32> to vector<16x32xf32>
    %6 = arith.addf %3, %5 : vector<16x32xf32>
    %cst_6 = arith.constant 0.000000e+00 : f32
    %7 = vector.broadcast %cst_6 : f32 to vector<16x32xf32>
    %8 = arith.maximumf %6, %7 : vector<16x32xf32>
    %cst_7 = arith.constant dense<0.000000e+00> : vector<32xf32>
    %9 = vector.multi_reduction <add>, %8, %cst_7 [0] : vector<16x32xf32> to vector<32xf32>
    %10 = vector.shape_cast %9 : vector<32xf32> to vector<1x32xf32>
    %cst_8 = arith.constant 1.600000e+01 : f32
    %11 = vector.broadcast %cst_8 : f32 to vector<1x32xf32>
    %12 = arith.divf %10, %11 : vector<1x32xf32>
    %13 = vector.broadcast %12 : vector<1x32xf32> to vector<16x32xf32>
    %14 = arith.subf %8, %13 : vector<16x32xf32>
    %15 = arith.mulf %14, %14 : vector<16x32xf32>
    %cst_9 = arith.constant dense<0.000000e+00> : vector<32xf32>
    %16 = vector.multi_reduction <add>, %15, %cst_9 [0] : vector<16x32xf32> to vector<32xf32>
    %17 = vector.shape_cast %16 : vector<32xf32> to vector<1x32xf32>
    %cst_10 = arith.constant 1.600000e+01 : f32
    %18 = vector.broadcast %cst_10 : f32 to vector<1x32xf32>
    %19 = arith.divf %17, %18 : vector<1x32xf32>
    %cst_11 = arith.constant 9.99999974E-6 : f32
    %20 = vector.broadcast %cst_11 : f32 to vector<1x32xf32>
    %21 = arith.addf %19, %20 : vector<1x32xf32>
    %22 = math.rsqrt %21 : vector<1x32xf32>
    %23 = vector.broadcast %22 : vector<1x32xf32> to vector<16x32xf32>
    %24 = arith.mulf %14, %23 : vector<16x32xf32>
    %cst_12 = arith.constant dense<0.000000e+00> : vector<32xf32>
    %25 = vector.multi_reduction <add>, %24, %cst_12 [0] : vector<16x32xf32> to vector<32xf32>
    %26 = vector.shape_cast %25 : vector<32xf32> to vector<1x32xf32>
    %cst_13 = arith.constant 1.600000e+01 : f32
    %27 = vector.broadcast %cst_13 : f32 to vector<1x32xf32>
    %28 = arith.divf %26, %27 : vector<1x32xf32>
    %c0_14 = arith.constant 0 : index
    %c0_15 = arith.constant 0 : index
    %c0_16 = arith.constant 0 : index
    %29 = vector.load %arg4[%c0_14, %c0_15, %c0_16] : memref<1x1x32xf32, #tpu.memory_space<vmem>>, vector<1x1x32xf32>
    %30 = vector.shape_cast %29 : vector<1x1x32xf32> to vector<1x32xf32>
    %31 = vector.shape_cast %28 : vector<1x32xf32> to vector<1x1x32xf32>
    tpu.vector_store %arg4[%c0_14, %c0_15, %c0_16], %31 {strides = array<i32>} : memref<1x1x32xf32, #tpu.memory_space<vmem>>, vector<1x1x32xf32>,
    return
  }
  func.func @transform_0(%arg0: i32) -> (i32, i32, i32) {
    %c0_i32 = arith.constant 0 : i32
    %c0_i32_0 = arith.constant 0 : i32
    %c0_i32_1 = arith.constant 0 : i32
    return %arg0, %c0_i32, %c0_i32_0 : i32, i32, i32
  }
  func.func @transform_1(%arg0: i32) -> (i32, i32) {
    %c0_i32 = arith.constant 0 : i32
    %c0_i32_0 = arith.constant 0 : i32
    %c0_i32_1 = arith.constant 0 : i32
    return %c0_i32, %c0_i32_0 : i32, i32
  }
  func.func @transform_2(%arg0: i32) -> (i32, i32) {
    %c0_i32 = arith.constant 0 : i32
    %c0_i32_0 = arith.constant 0 : i32
    %c0_i32_1 = arith.constant 0 : i32
    return %c0_i32, %c0_i32_0 : i32, i32
  }
  func.func @transform_3(%arg0: i32) -> (i32, i32, i32) {
    %c0_i32 = arith.constant 0 : i32
    %c0_i32_0 = arith.constant 0 : i32
    %c0_i32_1 = arith.constant 0 : i32
    return %arg0, %c0_i32, %c0_i32_0 : i32, i32, i32
  }
}

module attributes {stable_mosaic.version = 11 : i64} {
  func.func @_head_kernel(%arg0: memref<2x32xf32, #tpu.memory_space<vmem>>, %arg1: memref<32x32xf32, #tpu.memory_space<vmem>>, %arg2: memref<1x32xf32, #tpu.memory_space<vmem>>, %arg3: memref<32x32xf32, #tpu.memory_space<vmem>>, %arg4: memref<1x32xf32, #tpu.memory_space<vmem>>, %arg5: memref<32x8xf32, #tpu.memory_space<vmem>>, %arg6: memref<1x8xf32, #tpu.memory_space<vmem>>, %arg7: memref<2x8xf32, #tpu.memory_space<vmem>>) attributes {dimension_semantics = [], scalar_prefetch = 0 : i64, scratch_operands = 0 : i64, tpu.core_type = #tpu.core_type<tc>} {
    %c0 = arith.constant 0 : index
    %c0_0 = arith.constant 0 : index
    %0 = vector.load %arg0[%c0, %c0_0] : memref<2x32xf32, #tpu.memory_space<vmem>>, vector<2x32xf32>
    %c0_1 = arith.constant 0 : index
    %c0_2 = arith.constant 0 : index
    %1 = vector.load %arg1[%c0_1, %c0_2] : memref<32x32xf32, #tpu.memory_space<vmem>>, vector<32x32xf32>
    %cst = arith.constant dense<0.000000e+00> : vector<2x32xf32>
    %2 = tpu.matmul %0, %1, %cst {dimension_numbers = #tpu.dot_dimension_numbers<[1], [0], [0], [1], [0, 0, 1, 1], [], []>} : vector<2x32xf32>, vector<32x32xf32>, vector<2x32xf32> -> vector<2x32xf32>
    %c0_3 = arith.constant 0 : index
    %c0_4 = arith.constant 0 : index
    %3 = vector.load %arg2[%c0_3, %c0_4] : memref<1x32xf32, #tpu.memory_space<vmem>>, vector<1x32xf32>
    %4 = vector.broadcast %3 : vector<1x32xf32> to vector<2x32xf32>
    %5 = arith.addf %2, %4 : vector<2x32xf32>
    %cst_5 = arith.constant 0.000000e+00 : f32
    %6 = vector.broadcast %cst_5 : f32 to vector<2x32xf32>
    %7 = arith.maximumf %5, %6 : vector<2x32xf32>
    %c0_6 = arith.constant 0 : index
    %c0_7 = arith.constant 0 : index
    %8 = vector.load %arg3[%c0_6, %c0_7] : memref<32x32xf32, #tpu.memory_space<vmem>>, vector<32x32xf32>
    %cst_8 = arith.constant dense<0.000000e+00> : vector<2x32xf32>
    %9 = tpu.matmul %7, %8, %cst_8 {dimension_numbers = #tpu.dot_dimension_numbers<[1], [0], [0], [1], [0, 0, 1, 1], [], []>} : vector<2x32xf32>, vector<32x32xf32>, vector<2x32xf32> -> vector<2x32xf32>
    %c0_9 = arith.constant 0 : index
    %c0_10 = arith.constant 0 : index
    %10 = vector.load %arg4[%c0_9, %c0_10] : memref<1x32xf32, #tpu.memory_space<vmem>>, vector<1x32xf32>
    %11 = vector.broadcast %10 : vector<1x32xf32> to vector<2x32xf32>
    %12 = arith.addf %9, %11 : vector<2x32xf32>
    %cst_11 = arith.constant 0.000000e+00 : f32
    %13 = vector.broadcast %cst_11 : f32 to vector<2x32xf32>
    %14 = arith.maximumf %12, %13 : vector<2x32xf32>
    %c0_12 = arith.constant 0 : index
    %c0_13 = arith.constant 0 : index
    %15 = vector.load %arg5[%c0_12, %c0_13] : memref<32x8xf32, #tpu.memory_space<vmem>>, vector<32x8xf32>
    %cst_14 = arith.constant dense<0.000000e+00> : vector<2x8xf32>
    %16 = tpu.matmul %14, %15, %cst_14 {dimension_numbers = #tpu.dot_dimension_numbers<[1], [0], [0], [1], [0, 0, 1, 1], [], []>} : vector<2x32xf32>, vector<32x8xf32>, vector<2x8xf32> -> vector<2x8xf32>
    %c0_15 = arith.constant 0 : index
    %c0_16 = arith.constant 0 : index
    %17 = vector.load %arg6[%c0_15, %c0_16] : memref<1x8xf32, #tpu.memory_space<vmem>>, vector<1x8xf32>
    %18 = vector.broadcast %17 : vector<1x8xf32> to vector<2x8xf32>
    %19 = arith.addf %16, %18 : vector<2x8xf32>
    %20 = arith.mulf %19, %19 : vector<2x8xf32>
    %cst_17 = arith.constant dense<0.000000e+00> : vector<2xf32>
    %21 = vector.multi_reduction <add>, %20, %cst_17 [1] : vector<2x8xf32> to vector<2xf32>
    %22 = vector.shape_cast %21 : vector<2xf32> to vector<2x1xf32>
    %23 = math.sqrt %22 : vector<2x1xf32>
    %cst_18 = arith.constant 9.99999996E-13 : f32
    %24 = vector.broadcast %cst_18 : f32 to vector<2x1xf32>
    %25 = arith.maximumf %23, %24 : vector<2x1xf32>
    %26 = vector.broadcast %25 : vector<2x1xf32> to vector<2x8xf32>
    %27 = arith.divf %19, %26 : vector<2x8xf32>
    %c0_19 = arith.constant 0 : index
    %c0_20 = arith.constant 0 : index
    %28 = vector.load %arg7[%c0_19, %c0_20] : memref<2x8xf32, #tpu.memory_space<vmem>>, vector<2x8xf32>
    tpu.vector_store %arg7[%c0_19, %c0_20], %27 {strides = array<i32>} : memref<2x8xf32, #tpu.memory_space<vmem>>, vector<2x8xf32>,
    return
  }
}

</mosaic_0001>

<bundles_post_ra>
// kernel: style_encoder_forward.4
= control target key start
LH: loop header
LB: loop body
LE: loop exit
PB: predicated region body
PF: predicated region fallthrough
CT: control target
= control target key end

     0   :  { %s1046_s12 = smov 0   ;;  %s1647_s0 = inlined_call_operand.vmem [shape: bf16[2,256,27], index: 0, kind: input, shape index: {}]   ;;  %s1648_s1 = inlined_call_operand.vmem [shape: bf16[27,8], index: 1, kind: input, shape index: {}]   ;;  %s1649_s2 = inlined_call_operand.vmem [shape: f32[1,8], index: 2, kind: input, shape index: {}]   ;;  %s1650_s3 = inlined_call_operand.vmem [shape: f32[2,256,8], index: 3, kind: output, shape index: {}]  }
   0x1 LB: > { %s882_s13 = sadd.s32 4294967295, %s1023_s12   ;;  %p886_p0 = scmp.ge.s32.totalorder %s1023_s12, 1  ;;  %s1023_s12 = sphi %s1046_s12, %s13_s12  }
   0x2   : > { %p137_p1 = scmp.lt.s32.totalorder %s1023_s12, 3 }
   0x4   : > { %p138_p2 = pnand %p886_p0, %p137_p1 }
   0x5   : > { %v997_v0 = vld [vmem:[%s1648_s1] sm:$0xff] (!%p138_p2)   ;;  %vm355_vm0 = vcmask (!%p138_p2), 1044480   ;;  %v998_v1 = vld [vmem:[%s1648_s1 + $0x8] sm:$0x3f] (!%p138_p2)   ;;  %vm356_vm1 = vcmask (!%p138_p2), 1045504   ;;  %p161_p3 = scmp.lt.s32.totalorder (!%p138_p2), %s882_s13, 1 }
   0x6   : > { %141 = sbr.rel (%p138_p2) target bundleno = 431 (0x1af), region = 32  ;;  %948 = vmatprep.subr.bf16.mxu0 (!%p138_p2), %v997_v0  ;;  %984 = vmatprep.subr.bf16.mxu1 (!%p138_p2), %v997_v0  ;;  %v1025_v2 = vmov (!%p138_p2), 65535   ;;  %vm306_vm2 = vcmask (!%p138_p2), 220160   ;;  %v1103_v22 = vld [vmem:[%s1649_s2] ss:$0 sm:$0xff] (!%p138_p2)  ;;  %vm555_vm3 = vcmask (!%p138_p2), 64512  }
   0x7   : > { %949 = vmatpush3.bf16.msra.mxu0 (!%p138_p2), %v997_v0  ;;  %v357_v3 = vsel (!%p138_p2), %vm355_vm0, 4294967295, %v1025_v2  ;;  %986 = vmatpush3.bf16.msra.mxu1 (!%p138_p2), %v997_v0 }
   0x8   : > { %v358_v4 = vsel (!%p138_p2), %vm356_vm1, %v357_v3, 0 }
   0x9   : > { %v360_v5 = vand.u32 (!%p138_p2), %v998_v1, %v358_v4 }
   0xb   : > { %950 = vmatprep.subr.bf16.mxu0 (!%p138_p2), %v360_v5  ;;  %985 = vmatprep.subr.bf16.mxu1 (!%p138_p2), %v360_v5 }
   0xc   : > { %951 = vmatpush3.bf16.msra.mxu0 (!%p138_p2), %v360_v5  ;;  %987 = vmatpush3.bf16.msra.mxu1 (!%p138_p2), %v360_v5 }
   0xd   : > { %s1676_s13 = smov (!%p161_p3, %s882_s13), 1 }
   0xe   : > { %s928_s18 = sshll.u32 %s1676_s13, 7  ;;  %s929_s24 = sshll.u32 %s1676_s13, 8 }
   0xf   : > { %s1066_s21 = scalar_lea.vmem %s1647_s0, %s928_s18  ;;  %s1546_s27 = scalar_lea.vmem %s1650_s3, %s929_s24 }
  0x10   : > { %v999_v6 = vld [vmem:[%s1066_s21] sm:$0xff]   ;;  %v1000_v7 = vld [vmem:[%s1066_s21 + $0x8] sm:$0xff]   ;;  %v1001_v8 = vld [vmem:[%s1066_s21 + $0x10] sm:$0xff]  }
  0x11   : > { %952 = vmatprep.mubr.msk.bf16.mxu0 %vm306_vm2, %v999_v6  ;;  %v1002_v9 = vld [vmem:[%s1066_s21 + $0x18] sm:$0xff]   ;;  %v1003_v10 = vld [vmem:[%s1066_s21 + $0x20] sm:$0xff]   ;;  %v1008_v12 = vld [vmem:[%s1066_s21 + $0x48] sm:$0xff]  }
  0x12   : > { %953 = vmatmul.mubr.msk.bf16.vlgmr.msra.gmra.mrb[0].mxu0 %vm306_vm2, %v1000_v7  ;;  %v1007_v11 = vld [vmem:[%s1066_s21 + $0x40] sm:$0xff]   ;;  %v1009_v13 = vld [vmem:[%s1066_s21 + $0x50] sm:$0xff]   ;;  %v1004_v14 = vld [vmem:[%s1066_s21 + $0x28] sm:$0xff]  }
  0x13   : > { %956 = vmatprep.mubr.msk.bf16.mxu0 %vm306_vm2, %v1001_v8  ;;  %968 = vmatprep.mubr.msk.bf16.mxu1 %vm306_vm2, %v1007_v11  ;;  %v1010_v15 = vld [vmem:[%s1066_s21 + $0x58] sm:$0xff]   ;;  %v1005_v16 = vld [vmem:[%s1066_s21 + $0x30] sm:$0xff]   ;;  %v1011_v17 = vld [vmem:[%s1066_s21 + $0x60] sm:$0xff]  }
  0x14   : > { %969 = vmatmul.mubr.msk.bf16.vlgmr.msra.gmra.mrb[0].mxu1 %vm306_vm2, %v1008_v12  ;;  %v1006_v18 = vld [vmem:[%s1066_s21 + $0x38] sm:$0xff]   ;;  %v1012_v19 = vld [vmem:[%s1066_s21 + $0x68] sm:$0xff]   ;;  %v1013_v20 = vld [vmem:[%s1066_s21 + $0x70] sm:$0xff]  }
  0x15   : > { %972 = vmatprep.mubr.msk.bf16.mxu1 %vm306_vm2, %v1009_v13  ;;  %v1014_v21 = vld [vmem:[%s1066_s21 + $0x78] sm:$0xff]  }
  0x1a   : > { %957 = vmatmul.mubr.msk.bf16.gmra.mrb[4].mxu0 %vm306_vm2, %v1002_v9 }
  0x1b   : > { %960 = vmatprep.mubr.msk.bf16.mxu0 %vm306_vm2, %v1003_v10 }
  0x1c   : > { %973 = vmatmul.mubr.msk.bf16.gmra.mrb[4].mxu1 %vm306_vm2, %v1010_v15 }
  0x1d   : > { %976 = vmatprep.mubr.msk.bf16.mxu1 %vm306_vm2, %v1011_v17 }
  0x22   : > { %961 = vmatmul.mubr.msk.bf16.gmra.mrb[8].mxu0 %vm306_vm2, %v1004_v14 }
  0x23   : > { %964 = vmatprep.mubr.msk.bf16.mxu0 %vm306_vm2, %v1005_v16 }
  0x24   : > { %977 = vmatmul.mubr.msk.bf16.gmra.mrb[8].mxu1 %vm306_vm2, %v1012_v19 }
  0x25   : > { %980 = vmatprep.mubr.msk.bf16.mxu1 %vm306_vm2, %v1013_v20 }
  0x2a   : > { %965 = vmatmul.mubr.msk.bf16.gmra.mrb[12].mxu0 %vm306_vm2, %v1006_v18 }
  0x2c   : > { %981 = vmatmul.mubr.msk.bf16.gmra.mrb[12].mxu1 %vm306_vm2, %v1014_v21 }
  0xe5   : > { %v954_v23 = vpop.f32.mrb[0].mxu0 }
  0xe6   : > { %v396_v24 = vpop.f32.mrb[1].mxu0  ;;  %v1106_v25 = vadd.f32 %v954_v23, %v1103_v22 }
  0xe7   : > { %v1109_v26 = vadd.f32 %v1103_v22, %v396_v24  ;;  %v955_v27 = vpop.f32.mrb[2].mxu0  ;;  %v1127_v38 = vpop.f32.mrb[0].mxu1 }
  0xe8   : > { %v399_v28 = vpop.f32.mrb[3].mxu0  ;;  %v1113_v30 = vadd.f32 %v955_v27, %v1103_v22  ;;  %v525_v32 = vmax.f32 %v1106_v25, 0.0  ;;  %v460_v41 = vpop.f32.mrb[1].mxu1 }
  0xe9   : > { %v523_v29 = vmax.f32 %v1109_v26, 0.0  ;;  %v1116_v31 = vadd.f32 %v1103_v22, %v399_v28  ;;  %v1138_v46 = vpop.f32.mrb[2].mxu1 }
  0xea   : > { %v526_v35 = vmax.f32 %v1113_v30, 0.0  ;;  %v559_v42 = vsel %vm555_vm3, %v525_v32, 0.0  ;;  %v463_v49 = vpop.f32.mrb[3].mxu1 }
  0xeb   : > { %v524_v33 = vmax.f32 %v1116_v31, 0.0  ;;  %v556_v34 = vsel %vm555_vm3, %v523_v29, 0.0 }
  0xec   : > { %v561_v50 = vsel %vm555_vm3, %v526_v35, 0.0 }
  0xed   : > { %v557_v36 = vsel %vm555_vm3, %v524_v33, 0.0  ;;  %v958_v37 = vpop.f32.mrb[4].mxu0 }
  0xee   : > { %v558_v39 = vadd.f32 %v557_v36, %v556_v34  ;;  %v412_v40 = vpop.f32.mrb[5].mxu0  ;;  %v1133_v43 = vadd.f32 %v958_v37, %v1103_v22 }
  0xef   : > { %v1136_v44 = vadd.f32 %v1103_v22, %v412_v40  ;;  %v959_v45 = vpop.f32.mrb[6].mxu0  ;;  %v1159_v62 = vpop.f32.mrb[4].mxu1 }
  0xf0   : > { %v560_v47 = vadd.f32 %v559_v42, %v558_v39  ;;  %v415_v48 = vpop.f32.mrb[7].mxu0  ;;  %v1145_v52 = vadd.f32 %v959_v45, %v1103_v22  ;;  %v1661_v55 = vmax.f32 %v1133_v43, 0.0  ;;  %v476_v1 = vpop.f32.mrb[5].mxu1 }
  0xf1   : > { %v527_v51 = vmax.f32 %v1136_v44, 0.0  ;;  %v1148_v53 = vadd.f32 %v1103_v22, %v415_v48  ;;  %v1170_v6 = vpop.f32.mrb[6].mxu1  ;;  %v1664_v44 = vmax.f32 %v1133_v43, 0.0 }
  0xf2   : > { %v562_v54 = vadd.f32 %v561_v50, %v560_v47  ;;  %v1660_v59 = vmax.f32 %v1145_v52, 0.0  ;;  %v567_v2 = vsel %vm555_vm3, %v1661_v55, 0.0  ;;  %v479_v9 = vpop.f32.mrb[7].mxu1  ;;  %v1203_v47 = vadd.f32 %v1103_v22, %v460_v41 }
  0xf3   : > { %v563_v56 = vsel %vm555_vm3, %v527_v51, 0.0  ;;  %v1662_v57 = vmax.f32 %v1148_v53, 0.0 }
  0xf4   : > { %v564_v58 = vadd.f32 %v563_v56, %v562_v54  ;;  %v569_v10 = vsel %vm555_vm3, %v1660_v59, 0.0 }
  0xf5   : > { %v565_v60 = vsel %vm555_vm3, %v1662_v57, 0.0  ;;  %v962_v61 = vpop.f32.mrb[8].mxu0 }
  0xf6   : > { %v566_v63 = vadd.f32 %v565_v60, %v564_v58  ;;  %v428_v0 = vpop.f32.mrb[9].mxu0  ;;  %v1165_v3 = vadd.f32 %v962_v61, %v1103_v22 }
  0xf7   : > { %v1168_v4 = vadd.f32 %v1103_v22, %v428_v0  ;;  %v963_v5 = vpop.f32.mrb[10].mxu0  ;;  %v1191_v23 = vpop.f32.mrb[8].mxu1 }
  0xf8   : > { %v568_v7 = vadd.f32 %v567_v2, %v566_v63  ;;  %v431_v8 = vpop.f32.mrb[11].mxu0  ;;  %v1177_v12 = vadd.f32 %v963_v5, %v1103_v22  ;;  %v1657_v15 = vmax.f32 %v1165_v3, 0.0  ;;  %v492_v28 = vpop.f32.mrb[9].mxu1 }
  0xf9   : > { %v1658_v11 = vmax.f32 %v1168_v4, 0.0  ;;  %v1180_v13 = vadd.f32 %v1103_v22, %v431_v8  ;;  %v979_v40 = vpop.f32.mrb[10].mxu1  ;;  %v1226_v8 = vadd.f32 %v1103_v22, %v463_v49  ;;  %v1666_v43 = vmax.f32 %v1168_v4, 0.0 }
  0xfa   : > { %v570_v14 = vadd.f32 %v569_v10, %v568_v7  ;;  %v534_v19 = vmax.f32 %v1177_v12, 0.0  ;;  %v575_v34 = vsel %vm555_vm3, %v1657_v15, 0.0  ;;  %v495_v48 = vpop.f32.mrb[11].mxu1  ;;  %v1655_v7 = vmax.f32 %v1203_v47, 0.0 }
  0xfb   : > { %v571_v16 = vsel %vm555_vm3, %v1658_v11, 0.0  ;;  %v532_v17 = vmax.f32 %v1180_v13, 0.0 }
  0xfc   : > { %v572_v18 = vadd.f32 %v571_v16, %v570_v14  ;;  %v577_v50 = vsel %vm555_vm3, %v534_v19, 0.0 }
  0xfd   : > { %v573_v20 = vsel %vm555_vm3, %v532_v17, 0.0  ;;  %v966_v21 = vpop.f32.mrb[12].mxu0 }
  0xfe   : > { %v574_v24 = vadd.f32 %v573_v20, %v572_v18  ;;  %v444_v27 = vpop.f32.mrb[13].mxu0  ;;  %v1197_v36 = vadd.f32 %v966_v21, %v1103_v22  ;;  %v1233_v20 = vadd.f32 %v1127_v38, %v1103_v22  ;;  %v1247_v38 = vadd.f32 %v1103_v22, %v476_v1 }
  0xff   : > { %v1200_v37 = vadd.f32 %v1103_v22, %v444_v27  ;;  %v967_v39 = vpop.f32.mrb[14].mxu0  ;;  %v982_v10 = vpop.f32.mrb[12].mxu1  ;;  %v1237_v27 = vadd.f32 %v1138_v46, %v1103_v22 }
 0x100   : > { %v576_v42 = vadd.f32 %v575_v34, %v574_v24  ;;  %v447_v45 = vpop.f32.mrb[15].mxu0  ;;  %v1210_v56 = vadd.f32 %v967_v39, %v1103_v22  ;;  %v537_v61 = vmax.f32 %v1197_v36, 0.0  ;;  %v508_v16 = vpop.f32.mrb[13].mxu1  ;;  %v587_v39 = vsel %vm555_vm3, %v1655_v7, 0.0 }
 0x101   : > { %v535_v54 = vmax.f32 %v1200_v37, 0.0  ;;  %v1213_v58 = vadd.f32 %v1103_v22, %v447_v45  ;;  %v983_v21 = vpop.f32.mrb[14].mxu1  ;;  %v1653_v46 = vmax.f32 %v1237_v27, 0.0 }
 0x102   : > { %v578_v60 = vadd.f32 %v577_v50, %v576_v42  ;;  %v538_v2 = vmax.f32 %v1210_v56, 0.0  ;;  %v583_v18 = vsel %vm555_vm3, %v537_v61, 0.0  ;;  %v511_v34 = vpop.f32.mrb[15].mxu1  ;;  %v1652_v42 = vmax.f32 %v1226_v8, 0.0 }
 0x103   : > { %v579_v41 = vsel %vm555_vm3, %v535_v54, 0.0  ;;  %v536_v63 = vmax.f32 %v1213_v58, 0.0  ;;  %v1651_v50 = vmax.f32 %v1233_v20, 0.0 }
 0x104   : > { %v580_v0 = vadd.f32 %v579_v41, %v578_v60  ;;  %v585_v49 = vsel %vm555_vm3, %v538_v2, 0.0  ;;  %v589_v41 = vsel %vm555_vm3, %v1652_v42, 0.0  ;;  %v496_v42 = vadd.f32 %v1103_v22, %v495_v48 }
 0x105   : > { %v581_v5 = vsel %vm555_vm3, %v536_v63, 0.0  ;;  %v591_v1 = vsel %vm555_vm3, %v1651_v50, 0.0  ;;  %v509_v48 = vadd.f32 %v1103_v22, %v508_v16  ;;  %v520_v16 = vadd.f32 %v983_v21, %v1103_v22 }
 0x106   : > { %v582_v14 = vadd.f32 %v581_v5, %v580_v0  ;;  %v1654_v0 = vmax.f32 %v1247_v38, 0.0  ;;  %v1256_v5 = vadd.f32 %v1103_v22, %v479_v9 }
 0x107   : > { %v551_v15 = vmax.f32 %v509_v48, 0.0 }
 0x108   : > { %v584_v24 = vadd.f32 %v583_v18, %v582_v14  ;;  %v1263_v18 = vadd.f32 %v1159_v62, %v1103_v22  ;;  %v595_v9 = vsel %vm555_vm3, %v1654_v0, 0.0 }
 0x10a   : > { %v586_v45 = vadd.f32 %v585_v49, %v584_v24  ;;  %v1267_v49 = vadd.f32 %v1170_v6, %v1103_v22  ;;  %v1656_v62 = vmax.f32 %v1263_v18, 0.0 }
 0x10c   : > { %v588_v60 = vadd.f32 %v587_v39, %v586_v45  ;;  %v593_v39 = vsel %vm555_vm3, %v1653_v46, 0.0  ;;  %v544_v45 = vmax.f32 %v1256_v5, 0.0  ;;  %v599_v0 = vsel %vm555_vm3, %v1656_v62, 0.0 }
 0x10d   : > { %v501_v5 = vadd.f32 %v1191_v23, %v1103_v22  ;;  %v512_v23 = vadd.f32 %v1103_v22, %v511_v34 }
 0x10e   : > { %v590_v14 = vadd.f32 %v589_v41, %v588_v60  ;;  %v493_v60 = vadd.f32 %v1103_v22, %v492_v28  ;;  %v597_v6 = vsel %vm555_vm3, %v544_v45, 0.0 }
 0x110   : > { %v592_v24 = vadd.f32 %v591_v1, %v590_v14  ;;  %v1659_v1 = vmax.f32 %v1267_v49, 0.0  ;;  %v547_v50 = vmax.f32 %v493_v60, 0.0  ;;  %v548_v60 = vmax.f32 %v496_v42, 0.0 }
 0x111   : > { %v611_v42 = vsel %vm555_vm3, %v551_v15, 0.0 }
 0x112   : > { %v594_v41 = vadd.f32 %v593_v39, %v592_v24  ;;  %v601_v28 = vsel %vm555_vm3, %v1659_v1, 0.0  ;;  %v603_v39 = vsel %vm555_vm3, %v547_v50, 0.0  ;;  %v605_v62 = vsel %vm555_vm3, %v548_v60, 0.0 }
 0x114   : > { %v596_v14 = vadd.f32 %v595_v9, %v594_v41  ;;  %v504_v9 = vadd.f32 %v979_v40, %v1103_v22 }
 0x116   : > { %v598_v46 = vadd.f32 %v597_v6, %v596_v14  ;;  %v549_v14 = vmax.f32 %v501_v5, 0.0  ;;  %v550_v7 = vmax.f32 %v504_v9, 0.0  ;;  %v552_v5 = vmax.f32 %v512_v23, 0.0 }
 0x117   : > { %v554_v9 = vmax.f32 %v520_v16, 0.0 }
 0x118   : > { %v600_v24 = vadd.f32 %v599_v0, %v598_v46  ;;  %v607_v1 = vsel %vm555_vm3, %v549_v14, 0.0  ;;  %v517_v46 = vadd.f32 %v982_v10, %v1103_v22  ;;  %v609_v40 = vsel %vm555_vm3, %v550_v7, 0.0 }
 0x119   : > { %v613_v48 = vsel %vm555_vm3, %v552_v5, 0.0  ;;  %v617_v10 = vsel %vm555_vm3, %v554_v9, 0.0 }
 0x11a   : > { %v602_v41 = vadd.f32 %v601_v28, %v600_v24  ;;  %v553_v24 = vmax.f32 %v517_v46, 0.0 }
 0x11c   : > { %v604_v6 = vadd.f32 %v603_v39, %v602_v41 }
 0x11e   : > { %v606_v11 = vadd.f32 %v605_v62, %v604_v6  ;;  %v615_v62 = vsel %vm555_vm3, %v553_v24, 0.0 }
 0x120   : > { %v608_v0 = vadd.f32 %v607_v1, %v606_v11 }
 0x122   : > { %v610_v28 = vadd.f32 %v609_v40, %v608_v0 }
 0x124   : > { %v612_v39 = vadd.f32 %v611_v42, %v610_v28 }
 0x126   : > { %v614_v34 = vadd.f32 %v613_v48, %v612_v39 }
 0x128   : > { %v616_v41 = vadd.f32 %v615_v62, %v614_v34  ;;  %v1667_v62 = vmax.f32 %v1165_v3, 0.0 }
 0x12a   : > { %v618_v11 = vadd.f32 %v617_v10, %v616_v41 }
 0x12c   : > { %v619_v1 = vrot.slane %v618_v11, 4 }
 0x12e   : > { %v620_v6 = vadd.f32 %v619_v1, %v618_v11 }
 0x130   : > { %v621_v59 = vrot.slane %v620_v6, 2 }
 0x132   : > { %v622_v55 = vadd.f32 %v621_v59, %v620_v6 }
 0x134   : > { %v623_v57 = vrot.slane %v622_v55, 1 }
 0x136   : > { %v624_v22 = vadd.f32 %v623_v57, %v622_v55 }
 0x138   : > { %v1302_v21 = vmul.f32 0.00390625, %v624_v22 }
 0x13a   : > { %v1307_v23 = vsub.f32 %v532_v17, %v1302_v21  ;;  %v1312_v46 = vsub.f32 %v534_v19, %v1302_v21  ;;  %v1317_v0 = vsub.f32 %v535_v54, %v1302_v21  ;;  %v1322_v55 = vsub.f32 %v536_v63, %v1302_v21 }
 0x13b   : > { %v1327_v57 = vsub.f32 %v537_v61, %v1302_v21  ;;  %v1332_v59 = vsub.f32 %v538_v2, %v1302_v21  ;;  %v1335_v12 = vsub.f32 %v544_v45, %v1302_v21  ;;  %v1338_v13 = vsub.f32 %v547_v50, %v1302_v21 }
 0x13c   : > { %v1341_v17 = vsub.f32 %v548_v60, %v1302_v21  ;;  %v1344_v19 = vsub.f32 %v549_v14, %v1302_v21  ;;  %v1347_v36 = vsub.f32 %v550_v7, %v1302_v21  ;;  %v1350_v37 = vsub.f32 %v551_v15, %v1302_v21 }
 0x13d   : > { %v1353_v54 = vsub.f32 %v552_v5, %v1302_v21  ;;  %v1356_v56 = vsub.f32 %v553_v24, %v1302_v21  ;;  %v1359_v58 = vsub.f32 %v554_v9, %v1302_v21  ;;  %v1364_v61 = vsub.f32 %v523_v29, %v1302_v21 }
 0x13e   : > { %v1369_v63 = vsub.f32 %v524_v33, %v1302_v21  ;;  %v1374_v15 = vsub.f32 %v525_v32, %v1302_v21  ;;  %v1379_v2 = vsub.f32 %v526_v35, %v1302_v21  ;;  %v1388_v31 = vsub.f32 %v527_v51, %v1302_v21 }
 0x13f   : > { %v659_v26 = vmul.f32 %v1364_v61, %v1364_v61  ;;  %v1663_v32 = vmax.f32 %v1148_v53, 0.0  ;;  %v1404_v51 = vsub.f32 %v1664_v44, %v1302_v21  ;;  %v1665_v14 = vmax.f32 %v1145_v52, 0.0 }
 0x140   : > { %v660_v29 = vmul.f32 %v1369_v63, %v1369_v63  ;;  %v661_v25 = vmul.f32 %v1374_v15, %v1374_v15  ;;  %v662_v33 = vmul.f32 %v1379_v2, %v1379_v2  ;;  %v663_v45 = vmul.f32 %v1388_v31, %v1388_v31 }
 0x141   : > { %v1395_v30 = vsub.f32 %v1663_v32, %v1302_v21  ;;  %v691_v35 = vsel %vm555_vm3, %v659_v26, 0.0  ;;  %v1412_v40 = vsub.f32 %v1665_v14, %v1302_v21  ;;  %v1420_v28 = vsub.f32 %v1666_v43, %v1302_v21 }
 0x142   : > { %v692_v7 = vsel %vm555_vm3, %v660_v29, 0.0  ;;  %v694_v53 = vsel %vm555_vm3, %v661_v25, 0.0  ;;  %v696_v16 = vsel %vm555_vm3, %v662_v33, 0.0  ;;  %v665_v24 = vmul.f32 %v1404_v51, %v1404_v51 }
 0x143   : > { %v693_v50 = vadd.f32 %v692_v7, %v691_v35  ;;  %v664_v42 = vmul.f32 %v1395_v30, %v1395_v30  ;;  %v698_v39 = vsel %vm555_vm3, %v663_v45, 0.0  ;;  %v666_v52 = vmul.f32 %v1412_v40, %v1412_v40 }
 0x144   : > { %v1431_v41 = vsub.f32 %v1667_v62, %v1302_v21  ;;  %v667_v4 = vmul.f32 %v1420_v28, %v1420_v28  ;;  %v702_v10 = vsel %vm555_vm3, %v665_v24, 0.0  ;;  %v668_v1 = vmul.f32 %v1307_v23, %v1307_v23 }
 0x145   : > { %v695_v60 = vadd.f32 %v694_v53, %v693_v50  ;;  %v700_v48 = vsel %vm555_vm3, %v664_v42, 0.0  ;;  %v704_v6 = vsel %vm555_vm3, %v666_v52, 0.0  ;;  %v670_v25 = vmul.f32 %v1312_v46, %v1312_v46 }
 0x146   : > { %v669_v26 = vmul.f32 %v1431_v41, %v1431_v41  ;;  %v706_v29 = vsel %vm555_vm3, %v667_v4, 0.0  ;;  %v708_v32 = vsel %vm555_vm3, %v668_v1, 0.0  ;;  %v671_v35 = vmul.f32 %v1317_v0, %v1317_v0 }
 0x147   : > { %v697_v5 = vadd.f32 %v696_v16, %v695_v60  ;;  %v672_v44 = vmul.f32 %v1322_v55, %v1322_v55  ;;  %v712_v45 = vsel %vm555_vm3, %v670_v25, 0.0  ;;  %v1668_v60 = vmax.f32 %v1203_v47, 0.0 }
 0x148   : > { %v710_v7 = vsel %vm555_vm3, %v669_v26, 0.0  ;;  %v673_v42 = vmul.f32 %v1327_v57, %v1327_v57  ;;  %v714_v16 = vsel %vm555_vm3, %v671_v35, 0.0  ;;  %v1669_v43 = vmax.f32 %v1226_v8, 0.0 }
 0x149   : > { %v699_v9 = vadd.f32 %v698_v39, %v697_v5  ;;  %v1454_v14 = vsub.f32 %v1668_v60, %v1302_v21  ;;  %v674_v39 = vmul.f32 %v1332_v59, %v1332_v59  ;;  %v1670_v47 = vmax.f32 %v1233_v20, 0.0 }
 0x14a   : > { %v1462_v24 = vsub.f32 %v1669_v43, %v1302_v21  ;;  %v718_v62 = vsel %vm555_vm3, %v673_v42, 0.0  ;;  %v1671_v8 = vmax.f32 %v1237_v27, 0.0  ;;  %v1672_v20 = vmax.f32 %v1247_v38, 0.0 }
 0x14b   : > { %v701_v34 = vadd.f32 %v700_v48, %v699_v9  ;;  %v716_v9 = vsel %vm555_vm3, %v672_v44, 0.0  ;;  %v1470_v48 = vsub.f32 %v1670_v47, %v1302_v21  ;;  %v720_v1 = vsel %vm555_vm3, %v674_v39, 0.0 }
 0x14c   : > { %v1674_v44 = vmax.f32 %v1267_v49, 0.0  ;;  %v684_v47 = vmul.f32 %v1341_v17, %v1341_v17 }
 0x14d   : > { %v703_v11 = vadd.f32 %v702_v10, %v701_v34  ;;  %v675_v34 = vmul.f32 %v1454_v14, %v1454_v14  ;;  %v1478_v10 = vsub.f32 %v1671_v8, %v1302_v21  ;;  %v677_v26 = vmul.f32 %v1470_v48, %v1470_v48 }
 0x14f   : > { %v705_v22 = vadd.f32 %v704_v6, %v703_v11  ;;  %v676_v11 = vmul.f32 %v1462_v24, %v1462_v24  ;;  %v678_v27 = vmul.f32 %v1478_v10, %v1478_v10 }
 0x151   : > { %v707_v3 = vadd.f32 %v706_v29, %v705_v22  ;;  %v1486_v22 = vsub.f32 %v1672_v20, %v1302_v21  ;;  %v722_v29 = vsel %vm555_vm3, %v675_v34, 0.0  ;;  %v724_v25 = vsel %vm555_vm3, %v676_v11, 0.0 }
 0x152   : > { %v728_v60 = vsel %vm555_vm3, %v678_v27, 0.0  ;;  %v688_v27 = vmul.f32 %v1353_v54, %v1353_v54 }
 0x153   : > { %v709_v33 = vadd.f32 %v708_v32, %v707_v3  ;;  %v679_v38 = vmul.f32 %v1486_v22, %v1486_v22 }
 0x155   : > { %v711_v50 = vadd.f32 %v710_v7, %v709_v33  ;;  %v1673_v33 = vmax.f32 %v1263_v18, 0.0  ;;  %v726_v7 = vsel %vm555_vm3, %v677_v26, 0.0  ;;  %v687_v26 = vmul.f32 %v1350_v37, %v1350_v37 }
 0x157   : > { %v713_v53 = vadd.f32 %v712_v45, %v711_v50  ;;  %v1497_v35 = vsub.f32 %v1673_v33, %v1302_v21  ;;  %v1505_v45 = vsub.f32 %v1674_v44, %v1302_v21  ;;  %v683_v21 = vmul.f32 %v1338_v13, %v1338_v13 }
 0x158   : > { %v689_v33 = vmul.f32 %v1356_v56, %v1356_v56  ;;  %v748_v44 = vsel %vm555_vm3, %v688_v27, 0.0 }
 0x159   : > { %v715_v5 = vadd.f32 %v714_v16, %v713_v53  ;;  %v680_v53 = vmul.f32 %v1335_v12, %v1335_v12  ;;  %v681_v18 = vmul.f32 %v1497_v35, %v1497_v35  ;;  %v730_v16 = vsel %vm555_vm3, %v679_v38, 0.0 }
 0x15a   : > { %v682_v43 = vmul.f32 %v1505_v45, %v1505_v45  ;;  %v738_v8 = vsel %vm555_vm3, %v683_v21, 0.0  ;;  %v746_v38 = vsel %vm555_vm3, %v687_v26, 0.0 }
 0x15b   : > { %v717_v52 = vadd.f32 %v716_v9, %v715_v5  ;;  %v732_v39 = vsel %vm555_vm3, %v680_v53, 0.0  ;;  %v734_v9 = vsel %vm555_vm3, %v681_v18, 0.0 }
 0x15c   : > { %v736_v34 = vsel %vm555_vm3, %v682_v43, 0.0 }
 0x15d   : > { %v719_v4 = vadd.f32 %v718_v62, %v717_v52 }
 0x15f   : > { %v721_v6 = vadd.f32 %v720_v1, %v719_v4  ;;  %v685_v4 = vmul.f32 %v1344_v19, %v1344_v19  ;;  %v686_v1 = vmul.f32 %v1347_v36, %v1347_v36 }
 0x161   : > { %v723_v3 = vadd.f32 %v722_v29, %v721_v6  ;;  %v740_v6 = vsel %vm555_vm3, %v684_v47, 0.0  ;;  %v742_v29 = vsel %vm555_vm3, %v685_v4, 0.0 }
 0x163   : > { %v725_v32 = vadd.f32 %v724_v25, %v723_v3  ;;  %v744_v25 = vsel %vm555_vm3, %v686_v1, 0.0 }
 0x165   : > { %v727_v50 = vadd.f32 %v726_v7, %v725_v32 }
 0x167   : > { %v729_v42 = vadd.f32 %v728_v60, %v727_v50  ;;  %v690_v50 = vmul.f32 %v1359_v58, %v1359_v58  ;;  %v750_v60 = vsel %vm555_vm3, %v689_v33, 0.0 }
 0x169   : > { %v731_v5 = vadd.f32 %v730_v16, %v729_v42  ;;  %v752_v18 = vsel %vm555_vm3, %v690_v50, 0.0 }
 0x16b   : > { %v733_v49 = vadd.f32 %v732_v39, %v731_v5 }
 0x16d   : > { %v735_v52 = vadd.f32 %v734_v9, %v733_v49 }
 0x16f   : > { %v737_v62 = vadd.f32 %v736_v34, %v735_v52 }
 0x171   : > { %v739_v11 = vadd.f32 %v738_v8, %v737_v62 }
 0x173   : > { %v741_v20 = vadd.f32 %v740_v6, %v739_v11 }
 0x175   : > { %v743_v3 = vadd.f32 %v742_v29, %v741_v20 }
 0x177   : > { %v745_v32 = vadd.f32 %v744_v25, %v743_v3 }
 0x179   : > { %v747_v7 = vadd.f32 %v746_v38, %v745_v32 }
 0x17b   : > { %v749_v53 = vadd.f32 %v748_v44, %v747_v7 }
 0x17d   : > { %v751_v42 = vadd.f32 %v750_v60, %v749_v53 }
 0x17f   : > { %v753_v16 = vadd.f32 %v752_v18, %v751_v42 }
 0x181   : > { %v754_v5 = vrot.slane %v753_v16, 4 }
 0x183   : > { %v755_v43 = vadd.f32 %v754_v5, %v753_v16 }
 0x185   : > { %v756_v39 = vrot.slane %v755_v43, 2 }
 0x187   : > { %v757_v49 = vadd.f32 %v756_v39, %v755_v43 }
 0x189   : > { %v758_v21 = vrot.slane %v757_v49, 1 }
 0x18b   : > { %v759_v9 = vadd.f32 %v758_v21, %v757_v49 }
 0x18d   : > { %v760_v52 = vmul.f32 0.00390625, %v759_v9 }
 0x18f   : > { %v761_v47 = vadd.f32 1e-05, %v760_v52 }
 0x191   : > { %1015 = vrsqrt.f32 %v761_v47 }
 0x19b   : > { %v1016_v34 = vpop.eup %1015 }
 0x19c   : > { %v763_v62 = vmul.f32 %v1016_v34, %v1364_v61  ;;  %v764_v4 = vmul.f32 %v1016_v34, %v1369_v63  ;;  %v765_v8 = vmul.f32 %v1016_v34, %v1374_v15  ;;  %v766_v11 = vmul.f32 %v1016_v34, %v1379_v2 }
 0x19d   : > { %v767_v1 = vmul.f32 %v1016_v34, %v1388_v31  ;;  %v768_v6 = vmul.f32 %v1016_v34, %v1395_v30  ;;  %v769_v20 = vmul.f32 %v1016_v34, %v1404_v51  ;;  %v770_v26 = vmul.f32 %v1016_v34, %v1412_v40 }
 0x19e   : > { %v771_v61 = vmul.f32 %v1016_v34, %v1420_v28  ;;  %v772_v63 = vmul.f32 %v1016_v34, %v1307_v23  ;;  %v773_v15 = vmul.f32 %v1016_v34, %v1431_v41  ;;  %v774_v2 = vmul.f32 %v1016_v34, %v1312_v46  ;;  %795 = vst.msk [vmem:[%s1546_s27] sm:$0xff] %vm555_vm3, %v763_v62 }
 0x19f   : > { %796 = vst.msk [vmem:[%s1546_s27 + $0x8] sm:$0xff] %vm555_vm3, %v764_v4  ;;  %797 = vst.msk [vmem:[%s1546_s27 + $0x10] sm:$0xff] %vm555_vm3, %v765_v8  ;;  %v775_v31 = vmul.f32 %v1016_v34, %v1317_v0  ;;  %v776_v23 = vmul.f32 %v1016_v34, %v1322_v55  ;;  %v777_v30 = vmul.f32 %v1016_v34, %v1327_v57 }
 0x1a0   : > { %798 = vst.msk [vmem:[%s1546_s27 + $0x18] sm:$0xff] %vm555_vm3, %v766_v11  ;;  %v778_v46 = vmul.f32 %v1016_v34, %v1332_v59  ;;  %799 = vst.msk [vmem:[%s1546_s27 + $0x20] sm:$0xff] %vm555_vm3, %v767_v1  ;;  %v779_v0 = vmul.f32 %v1016_v34, %v1454_v14  ;;  %v780_v55 = vmul.f32 %v1016_v34, %v1462_v24 }
 0x1a1   : > { %800 = vst.msk [vmem:[%s1546_s27 + $0x28] sm:$0xff] %vm555_vm3, %v768_v6  ;;  %801 = vst.msk [vmem:[%s1546_s27 + $0x30] sm:$0xff] %vm555_vm3, %v769_v20  ;;  %v781_v57 = vmul.f32 %v1016_v34, %v1470_v48  ;;  %v782_v59 = vmul.f32 %v1016_v34, %v1478_v10  ;;  %v783_v51 = vmul.f32 %v1016_v34, %v1486_v22 }
 0x1a2   : > { %802 = vst.msk [vmem:[%s1546_s27 + $0x38] sm:$0xff] %vm555_vm3, %v770_v26  ;;  %803 = vst.msk [vmem:[%s1546_s27 + $0x40] sm:$0xff] %vm555_vm3, %v771_v61  ;;  %v784_v40 = vmul.f32 %v1016_v34, %v1335_v12  ;;  %v785_v28 = vmul.f32 %v1016_v34, %v1497_v35  ;;  %v786_v41 = vmul.f32 %v1016_v34, %v1505_v45 }
 0x1a3   : > { %804 = vst.msk [vmem:[%s1546_s27 + $0x48] sm:$0xff] %vm555_vm3, %v772_v63  ;;  %805 = vst.msk [vmem:[%s1546_s27 + $0x50] sm:$0xff] %vm555_vm3, %v773_v15  ;;  %v787_v14 = vmul.f32 %v1016_v34, %v1338_v13  ;;  %v788_v12 = vmul.f32 %v1016_v34, %v1341_v17  ;;  %v789_v24 = vmul.f32 %v1016_v34, %v1344_v19 }
 0x1a4   : > { %806 = vst.msk [vmem:[%s1546_s27 + $0x58] sm:$0xff] %vm555_vm3, %v774_v2  ;;  %807 = vst.msk [vmem:[%s1546_s27 + $0x60] sm:$0xff] %vm555_vm3, %v775_v31  ;;  %v790_v48 = vmul.f32 %v1016_v34, %v1347_v36  ;;  %v791_v13 = vmul.f32 %v1016_v34, %v1350_v37  ;;  %v792_v17 = vmul.f32 %v1016_v34, %v1353_v54 }
 0x1a5   : > { %808 = vst.msk [vmem:[%s1546_s27 + $0x68] sm:$0xff] %vm555_vm3, %v776_v23  ;;  %809 = vst.msk [vmem:[%s1546_s27 + $0x70] sm:$0xff] %vm555_vm3, %v777_v30  ;;  %v793_v19 = vmul.f32 %v1016_v34, %v1356_v56  ;;  %v794_v36 = vmul.f32 %v1016_v34, %v1359_v58 }
 0x1a6   : > { %810 = vst.msk [vmem:[%s1546_s27 + $0x78] sm:$0xff] %vm555_vm3, %v778_v46  ;;  %811 = vst.msk [vmem:[%s1546_s27 + $0x80] sm:$0xff] %vm555_vm3, %v779_v0 }
 0x1a7   : > { %812 = vst.msk [vmem:[%s1546_s27 + $0x88] sm:$0xff] %vm555_vm3, %v780_v55  ;;  %813 = vst.msk [vmem:[%s1546_s27 + $0x90] sm:$0xff] %vm555_vm3, %v781_v57 }
 0x1a8   : > { %814 = vst.msk [vmem:[%s1546_s27 + $0x98] sm:$0xff] %vm555_vm3, %v782_v59  ;;  %815 = vst.msk [vmem:[%s1546_s27 + $0xa0] sm:$0xff] %vm555_vm3, %v783_v51 }
 0x1a9   : > { %816 = vst.msk [vmem:[%s1546_s27 + $0xa8] sm:$0xff] %vm555_vm3, %v784_v40  ;;  %817 = vst.msk [vmem:[%s1546_s27 + $0xb0] sm:$0xff] %vm555_vm3, %v785_v28 }
 0x1aa   : > { %818 = vst.msk [vmem:[%s1546_s27 + $0xb8] sm:$0xff] %vm555_vm3, %v786_v41  ;;  %819 = vst.msk [vmem:[%s1546_s27 + $0xc0] sm:$0xff] %vm555_vm3, %v787_v14 }
 0x1ab   : > { %820 = vst.msk [vmem:[%s1546_s27 + $0xc8] sm:$0xff] %vm555_vm3, %v788_v12  ;;  %821 = vst.msk [vmem:[%s1546_s27 + $0xd0] sm:$0xff] %vm555_vm3, %v789_v24 }
 0x1ac   : > { %822 = vst.msk [vmem:[%s1546_s27 + $0xd8] sm:$0xff] %vm555_vm3, %v790_v48  ;;  %823 = vst.msk [vmem:[%s1546_s27 + $0xe0] sm:$0xff] %vm555_vm3, %v791_v13 }
 0x1ad   : > { %824 = vst.msk [vmem:[%s1546_s27 + $0xe8] sm:$0xff] %vm555_vm3, %v792_v17  ;;  %825 = vst.msk [vmem:[%s1546_s27 + $0xf0] sm:$0xff] %vm555_vm3, %v793_v19 }
 0x1ae   : > { %826 = vst.msk [vmem:[%s1546_s27 + $0xf8] sm:$0xff] %vm555_vm3, %v794_v36 }
 0x1af PF: > { %s13_s12 = sadd.s32 1, %s1023_s12  }
 0x1b0   : > { %p10_p4 = scmp.ge.s32.totalorder %s13_s12, 4  }
 0x1b2   :  { %12 = sbr.rel (!%p10_p4) target bundleno = 1 (0x1), region = 62 }

// kernel: style_encoder_forward.5
= control target key start
LH: loop header
LB: loop body
LE: loop exit
PB: predicated region body
PF: predicated region fallthrough
CT: control target
= control target key end

     0   :  { %s581_s12 = smov 0   ;;  %s648_s0 = inlined_call_operand.vmem [shape: bf16[2,64,72], index: 0, kind: input, shape index: {}]   ;;  %s649_s1 = inlined_call_operand.vmem [shape: bf16[72,16], index: 1, kind: input, shape index: {}]   ;;  %s650_s2 = inlined_call_operand.vmem [shape: f32[1,16], index: 2, kind: input, shape index: {}]   ;;  %s651_s3 = inlined_call_operand.vmem [shape: f32[2,64,16], index: 3, kind: output, shape index: {}]  }
   0x1 LB: > { %s468_s13 = sadd.s32 4294967295, %s559_s12   ;;  %p472_p0 = scmp.ge.s32.totalorder %s559_s12, 1  ;;  %s559_s12 = sphi %s581_s12, %s13_s12  }
   0x2   : > { %p137_p1 = scmp.lt.s32.totalorder %s559_s12, 3 }
   0x4   : > { %p138_p2 = pnand %p472_p0, %p137_p1 }
   0x5   : > { %v542_v0 = vld [vmem:[%s649_s1] sm:$0xff] (!%p138_p2)   ;;  %v543_v1 = vld [vmem:[%s649_s1 + $0x8] sm:$0xff] (!%p138_p2)   ;;  %p161_p3 = scmp.lt.s32.totalorder (!%p138_p2), %s468_s13, 1  ;;  %v544_v2 = vld [vmem:[%s649_s1 + $0x10] sm:$0xff] (!%p138_p2)   ;;  %vm243_vm0 = vcmask (!%p138_p2), 588800   ;;  %vm256_vm1 = vcmask (!%p138_p2), 1043456  }
   0x6   : > { %141 = sbr.rel (%p138_p2) target bundleno = 326 (0x146), region = 32  ;;  %504 = vmatprep.subr.bf16.mxu0 (!%p138_p2), %v542_v0  ;;  %522 = vmatprep.subr.bf16.mxu1 (!%p138_p2), %v542_v0  ;;  %v545_v4 = vld [vmem:[%s649_s1 + $0x18] sm:$0xff] (!%p138_p2)   ;;  %v546_v6 = vld [vmem:[%s649_s1 + $0x20] ss:$0 sps:$4 sm:$0xff] (!%p138_p2)   ;;  %vm333_vm2 = vcmask (!%p138_p2), 130048  }
   0x7   : > { %505 = vmatpush3.bf16.msra.mxu0 (!%p138_p2), %v542_v0  ;;  %527 = vmatpush3.bf16.msra.mxu1 (!%p138_p2), %v542_v0  ;;  %v258_v7 = vsel (!%p138_p2), %vm256_vm1, %v546_v6, 0  ;;  %v477_v10 = vld [vmem:[%s650_s2] ss:$0 sm:$0xff] (!%p138_p2) }
   0x8   : > { %506 = vmatprep.subr.bf16.mxu0 (!%p138_p2), %v543_v1  ;;  %523 = vmatprep.subr.bf16.mxu1 (!%p138_p2), %v543_v1 }
   0xb   : > { %507 = vmatpush3.bf16.msra.mxu0 (!%p138_p2), %v543_v1  ;;  %528 = vmatpush3.bf16.msra.mxu1 (!%p138_p2), %v543_v1 }
   0xc   : > { %508 = vmatprep.subr.bf16.mxu0 (!%p138_p2), %v544_v2  ;;  %524 = vmatprep.subr.bf16.mxu1 (!%p138_p2), %v544_v2 }
   0xd   : > { %s653_s13 = smov (!%p161_p3, %s468_s13), 1 }
   0xe   : > { %s493_s20 = sshll.u32 %s653_s13, 5  ;;  %s494_s30 = sshll.u32 %s653_s13, 6 }
   0xf   : > { %s165_s23 = scalar_lea.vmem %s648_s0, %s493_s20  ;;  %509 = vmatpush3.bf16.msra.mxu0 %v544_v2  ;;  %529 = vmatpush3.bf16.msra.mxu1 %v544_v2  ;;  %s170_s6 = scalar_lea.vmem %s651_s3, %s494_s30 }
  0x10   : > { %v547_v3 = vld [vmem:[%s165_s23] sm:$0xff]   ;;  %v549_v5 = vld [vmem:[%s165_s23 + $0x10] sm:$0xff]   ;;  %510 = vmatprep.subr.bf16.mxu0 %v545_v4  ;;  %525 = vmatprep.subr.bf16.mxu1 %v545_v4  ;;  %v548_v8 = vld [vmem:[%s165_s23 + $0x8] sm:$0xff]  }
  0x11   : > { %514 = vmatprep.mubr.msk.bf16.mxu0 %vm243_vm0, %v547_v3  ;;  %518 = vmatprep.mubr.msk.bf16.mxu1 %vm243_vm0, %v549_v5  ;;  %v550_v9 = vld [vmem:[%s165_s23 + $0x18] sm:$0xff]  }
  0x13   : > { %511 = vmatpush3.bf16.msra.mxu0 %v545_v4  ;;  %530 = vmatpush3.bf16.msra.mxu1 %v545_v4 }
  0x14   : > { %532 = vmatprep.subr.msk.bf16.mxu0 %vm256_vm1, %v546_v6  ;;  %533 = vmatprep.subr.msk.bf16.mxu1 %vm256_vm1, %v546_v6 }
  0x17   : > { %513 = vmatpush3.bf16.msra.mxu0 %v258_v7  ;;  %531 = vmatpush3.bf16.msra.mxu1 %v258_v7 }
  0x1a   : > { %515 = vmatmul.mubr.msk.bf16.vlgmr.msra.gmra.mrb[0].mxu0 %vm243_vm0, %v548_v8  ;;  %519 = vmatmul.mubr.msk.bf16.vlgmr.msra.gmra.mrb[0].mxu1 %vm243_vm0, %v550_v9 }
  0xed   : > { %v516_v11 = vpop.f32.mrb[0].mxu0  ;;  %v520_v12 = vpop.f32.mrb[0].mxu1 }
  0xee   : > { %v294_v13 = vpop.f32.mrb[1].mxu0  ;;  %v310_v14 = vpop.f32.mrb[1].mxu1  ;;  %v303_v15 = vadd.f32 %v516_v11, %v477_v10  ;;  %v319_v34 = vadd.f32 %v520_v12, %v477_v10 }
  0xef   : > { %v295_v16 = vadd.f32 %v477_v10, %v294_v13  ;;  %v517_v17 = vpop.f32.mrb[2].mxu0  ;;  %v521_v18 = vpop.f32.mrb[2].mxu1  ;;  %v311_v20 = vadd.f32 %v477_v10, %v310_v14 }
  0xf0   : > { %v297_v19 = vpop.f32.mrb[3].mxu0  ;;  %v313_v21 = vpop.f32.mrb[3].mxu1  ;;  %v306_v23 = vadd.f32 %v517_v17, %v477_v10  ;;  %v327_v25 = vmax.f32 %v303_v15, 0.0  ;;  %v322_v38 = vadd.f32 %v521_v18, %v477_v10  ;;  %v331_v41 = vmax.f32 %v319_v34, 0.0 }
  0xf1   : > { %v325_v22 = vmax.f32 %v295_v16, 0.0  ;;  %v298_v24 = vadd.f32 %v477_v10, %v297_v19  ;;  %v329_v27 = vmax.f32 %v311_v20, 0.0  ;;  %v314_v31 = vadd.f32 %v477_v10, %v313_v21 }
  0xf2   : > { %v328_v29 = vmax.f32 %v306_v23, 0.0  ;;  %v337_v33 = vsel %vm333_vm2, %v327_v25, 0.0  ;;  %v332_v43 = vmax.f32 %v322_v38, 0.0  ;;  %v345_v46 = vsel %vm333_vm2, %v331_v41, 0.0 }
  0xf3   : > { %v326_v26 = vmax.f32 %v298_v24, 0.0  ;;  %v334_v28 = vsel %vm333_vm2, %v325_v22, 0.0  ;;  %v341_v37 = vsel %vm333_vm2, %v329_v27, 0.0  ;;  %v330_v39 = vmax.f32 %v314_v31, 0.0 }
  0xf4   : > { %v339_v36 = vsel %vm333_vm2, %v328_v29, 0.0  ;;  %v347_v48 = vsel %vm333_vm2, %v332_v43, 0.0 }
  0xf5   : > { %v335_v30 = vsel %vm333_vm2, %v326_v26, 0.0  ;;  %v343_v44 = vsel %vm333_vm2, %v330_v39, 0.0 }
  0xf6   : > { %v336_v32 = vadd.f32 %v335_v30, %v334_v28 }
  0xf8   : > { %v338_v35 = vadd.f32 %v337_v33, %v336_v32 }
  0xfa   : > { %v340_v40 = vadd.f32 %v339_v36, %v338_v35 }
  0xfc   : > { %v342_v42 = vadd.f32 %v341_v37, %v340_v40 }
  0xfe   : > { %v344_v45 = vadd.f32 %v343_v44, %v342_v42 }
 0x100   : > { %v346_v47 = vadd.f32 %v345_v46, %v344_v45 }
 0x102   : > { %v348_v49 = vadd.f32 %v347_v48, %v346_v47 }
 0x104   : > { %v349_v50 = vrot.slane %v348_v49, 4 }
 0x106   : > { %v350_v51 = vadd.f32 %v349_v50, %v348_v49 }
 0x108   : > { %v351_v52 = vrot.slane %v350_v51, 2 }
 0x10a   : > { %v352_v53 = vadd.f32 %v351_v52, %v350_v51 }
 0x10c   : > { %v353_v54 = vrot.slane %v352_v53, 1 }
 0x10e   : > { %v354_v55 = vadd.f32 %v353_v54, %v352_v53 }
 0x110   : > { %v356_v56 = vmul.f32 0.015625, %v354_v55 }
 0x112   : > { %v357_v57 = vsub.f32 %v325_v22, %v356_v56  ;;  %v358_v58 = vsub.f32 %v326_v26, %v356_v56  ;;  %v359_v59 = vsub.f32 %v327_v25, %v356_v56  ;;  %v360_v60 = vsub.f32 %v328_v29, %v356_v56 }
 0x113   : > { %v361_v61 = vsub.f32 %v329_v27, %v356_v56  ;;  %v362_v62 = vsub.f32 %v330_v39, %v356_v56  ;;  %v363_v63 = vsub.f32 %v331_v41, %v356_v56  ;;  %v364_v0 = vsub.f32 %v332_v43, %v356_v56 }
 0x114   : > { %v365_v1 = vmul.f32 %v357_v57, %v357_v57  ;;  %v366_v2 = vmul.f32 %v358_v58, %v358_v58  ;;  %v367_v3 = vmul.f32 %v359_v59, %v359_v59  ;;  %v368_v4 = vmul.f32 %v360_v60, %v360_v60 }
 0x115   : > { %v369_v8 = vmul.f32 %v361_v61, %v361_v61  ;;  %v370_v11 = vmul.f32 %v362_v62, %v362_v62  ;;  %v371_v14 = vmul.f32 %v363_v63, %v363_v63  ;;  %v372_v17 = vmul.f32 %v364_v0, %v364_v0 }
 0x116   : > { %v373_v5 = vsel %vm333_vm2, %v365_v1, 0.0  ;;  %v374_v6 = vsel %vm333_vm2, %v366_v2, 0.0  ;;  %v376_v9 = vsel %vm333_vm2, %v367_v3, 0.0  ;;  %v378_v12 = vsel %vm333_vm2, %v368_v4, 0.0 }
 0x117   : > { %v375_v7 = vadd.f32 %v374_v6, %v373_v5  ;;  %v380_v15 = vsel %vm333_vm2, %v369_v8, 0.0  ;;  %v382_v18 = vsel %vm333_vm2, %v370_v11, 0.0  ;;  %v384_v20 = vsel %vm333_vm2, %v371_v14, 0.0 }
 0x118   : > { %v386_v22 = vsel %vm333_vm2, %v372_v17, 0.0 }
 0x119   : > { %v377_v10 = vadd.f32 %v376_v9, %v375_v7 }
 0x11b   : > { %v379_v13 = vadd.f32 %v378_v12, %v377_v10 }
 0x11d   : > { %v381_v16 = vadd.f32 %v380_v15, %v379_v13 }
 0x11f   : > { %v383_v19 = vadd.f32 %v382_v18, %v381_v16 }
 0x121   : > { %v385_v21 = vadd.f32 %v384_v20, %v383_v19 }
 0x123   : > { %v387_v23 = vadd.f32 %v386_v22, %v385_v21 }
 0x125   : > { %v388_v24 = vrot.slane %v387_v23, 4 }
 0x127   : > { %v389_v25 = vadd.f32 %v388_v24, %v387_v23 }
 0x129   : > { %v390_v26 = vrot.slane %v389_v25, 2 }
 0x12b   : > { %v391_v27 = vadd.f32 %v390_v26, %v389_v25 }
 0x12d   : > { %v392_v28 = vrot.slane %v391_v27, 1 }
 0x12f   : > { %v393_v29 = vadd.f32 %v392_v28, %v391_v27 }
 0x131   : > { %v394_v30 = vmul.f32 0.015625, %v393_v29 }
 0x133   : > { %v395_v31 = vadd.f32 1e-05, %v394_v30 }
 0x135   : > { %551 = vrsqrt.f32 %v395_v31 }
 0x13f   : > { %v552_v32 = vpop.eup %551 }
 0x140   : > { %v397_v33 = vmul.f32 %v552_v32, %v357_v57  ;;  %v398_v34 = vmul.f32 %v552_v32, %v358_v58  ;;  %v399_v35 = vmul.f32 %v552_v32, %v359_v59  ;;  %v400_v36 = vmul.f32 %v552_v32, %v360_v60 }
 0x141   : > { %v401_v37 = vmul.f32 %v552_v32, %v361_v61  ;;  %v402_v38 = vmul.f32 %v552_v32, %v362_v62  ;;  %v403_v39 = vmul.f32 %v552_v32, %v363_v63  ;;  %v404_v40 = vmul.f32 %v552_v32, %v364_v0 }
 0x142   : > { %405 = vst.msk [vmem:[%s170_s6] sm:$0xff] %vm333_vm2, %v397_v33  ;;  %406 = vst.msk [vmem:[%s170_s6 + $0x8] sm:$0xff] %vm333_vm2, %v398_v34 }
 0x143   : > { %407 = vst.msk [vmem:[%s170_s6 + $0x10] sm:$0xff] %vm333_vm2, %v399_v35  ;;  %408 = vst.msk [vmem:[%s170_s6 + $0x18] sm:$0xff] %vm333_vm2, %v400_v36 }
 0x144   : > { %409 = vst.msk [vmem:[%s170_s6 + $0x20] sm:$0xff] %vm333_vm2, %v401_v37  ;;  %410 = vst.msk [vmem:[%s170_s6 + $0x28] sm:$0xff] %vm333_vm2, %v402_v38 }
 0x145   : > { %411 = vst.msk [vmem:[%s170_s6 + $0x30] sm:$0xff] %vm333_vm2, %v403_v39  ;;  %412 = vst.msk [vmem:[%s170_s6 + $0x38] sm:$0xff] %vm333_vm2, %v404_v40 }
 0x146 PF: > { %s13_s12 = sadd.s32 1, %s559_s12  }
 0x147   : > { %p10_p4 = scmp.ge.s32.totalorder %s13_s12, 4  }
 0x149   :  { %12 = sbr.rel (!%p10_p4) target bundleno = 1 (0x1), region = 62 }

// kernel: style_encoder_forward.7
= control target key start
LH: loop header
LB: loop body
LE: loop exit
PB: predicated region body
PF: predicated region fallthrough
CT: control target
= control target key end

     0   :  { %v417_v3 = vmov 0.0|0.0   ;;  %vm418_vm0 = vmmov 0   ;;  %v419_v6 = vmov 0.0   ;;  %s529_s0 = inlined_call_operand.vmem [shape: f32[2,32], index: 0, kind: input, shape index: {}]   ;;  %s530_s1 = inlined_call_operand.vmem [shape: f32[32,32], index: 1, kind: input, shape index: {}]   ;;  %s531_s2 = inlined_call_operand.vmem [shape: f32[1,32], index: 2, kind: input, shape index: {}]   ;;  %s532_s3 = inlined_call_operand.vmem [shape: f32[32,32], index: 3, kind: input, shape index: {}]   ;;  %s533_s4 = inlined_call_operand.vmem [shape: f32[1,32], index: 4, kind: input, shape index: {}]   ;;  %s534_s5 = inlined_call_operand.vmem [shape: f32[32,8], index: 5, kind: input, shape index: {}]   ;;  %s535_s6 = inlined_call_operand.vmem [shape: f32[1,8], index: 6, kind: input, shape index: {}]   ;;  %s536_s7 = inlined_call_operand.hbm [shape: f32[2,8], index: 7, kind: output, shape index: {}]  }
   0x1   :  { %v28_v0 = vld [vmem:[%s530_s1] sm:$0xff]  ;;  %v29_v1 = vld [vmem:[%s530_s1 + $0x8] sm:$0xff]  ;;  %v30_v2 = vld [vmem:[%s530_s1 + $0x10] sm:$0xff]  ;;  %367 = vmatprep.subr.bf16.mxu0 %v417_v3  ;;  %342 = vmatprep.mubr.msk.f32.mxu0 %vm418_vm0, %v419_v6 }
   0x2   :  { %v368_v4 = vpack.c.bf16 %v29_v1, %v28_v0  ;;  %v31_v5 = vld [vmem:[%s530_s1 + $0x18] sm:$0xff]  ;;  %v114_v7 = vld [vmem:[%s532_s3] sm:$0xff]  ;;  %373 = vmatprep.subr.bf16.mxu1 %v417_v3  ;;  %v115_v8 = vld [vmem:[%s532_s3 + $0x8] sm:$0xff]  ;;  %353 = vmatprep.mubr.msk.f32.mxu1 %vm418_vm0, %v419_v6 }
   0x3   :  { %12 = vsyncpa [#allocation3], 0  ;;  %v371_v9 = vpack.c.bf16 %v31_v5, %v30_v2  ;;  %v374_v10 = vpack.c.bf16 %v115_v8, %v114_v7  ;;  %v27_v11 = vld [vmem:[%s529_s0] sm:$0x3]  ;;  %vm39_vm1 = vcmask 261120   ;;  %v116_v12 = vld [vmem:[%s532_s3 + $0x10] sm:$0xff] }
   0x4   :  { %369 = vmatpush3.bf16.msra.mxu0 %v368_v4  ;;  %v117_v13 = vld [vmem:[%s532_s3 + $0x18] sm:$0xff]  ;;  %v199_v15 = vld [vmem:[%s534_s5] sm:$0xff]  ;;  %v200_v16 = vld [vmem:[%s534_s5 + $0x8] sm:$0xff]  ;;  %vm284_vm2 = vcmask 58368  }
   0x5   :  { %370 = vmatprep.subr.bf16.mxu0 %v417_v3  ;;  %375 = vmatpush3.bf16.msra.mxu1 %v374_v10  ;;  %v377_v14 = vpack.c.bf16 %v117_v13, %v116_v12  ;;  %v380_v17 = vpack.c.bf16 %v200_v16, %v199_v15  ;;  %v313_v18 = vld [vmem:[%s531_s2] ss:$0 sm:$0xff]  ;;  %v201_v23 = vld [vmem:[%s534_s5 + $0x10] sm:$0xff]  ;;  %v202_v24 = vld [vmem:[%s534_s5 + $0x18] sm:$0xff] }
   0x6   :  { %376 = vmatprep.subr.bf16.mxu1 %v417_v3  ;;  %v383_v25 = vpack.c.bf16 %v202_v24, %v201_v23  ;;  %v315_v26 = vld [vmem:[%s533_s4] ss:$0 sm:$0xff]  ;;  %s420_s4 = smov [#allocation2]  }
   0x7   :  { %v317_v31 = vld [vmem:[%s535_s6] ss:$0 sm:$0xff]  ;;  %s305_s5 = sshll.u32 %s420_s4, 4  ;;  %s306_s5 = int_to_ptr.vmem [resolvable:$true] %s305_s5 }
   0x8   :  { %372 = vmatpush3.bf16.msra.mxu0 %v371_v9  ;;  %s393_s6 = scalar_lea.vmem %s306_s5, 32  ;;  %p398_p1 = scmp.lt.s32.totalorder %s306_s5, %s306_s5 }
   0x9   :  { %379 = vmatprep.subr.bf16.mxu0 %v417_v3  ;;  %378 = vmatpush3.bf16.msra.mxu1 %v377_v14  ;;  %p394_p0 = scmp.ne.s32.totalorder %s306_s5, %s393_s6  ;;  %p399_p2 = scmp.lt.s32.totalorder %s393_s6, %s393_s6 }
   0xb   :  { %343 = vmatmul.mubr.msk.f32.vlgmr.msra.gmra.mrb[0].mxu0 %vm39_vm1, %v27_v11  ;;  %p400_p3 = por %p399_p2, %p398_p1 }
   0xc   :  { %364 = vmatprep.mubr.msk.f32.mxu0 %vm418_vm0, %v419_v6  ;;  %381 = vmatpush3.bf16.msra.mxu0 %v380_v17 }
   0xd   :  { %382 = vmatprep.subr.bf16.mxu0 %v417_v3  ;;  %p401_p4 = pnand %p400_p3, %p394_p0 }
  0x10   :  { %384 = vmatpush3.bf16.msra.mxu0 %v383_v25 }
  0xde   :  { %v109_v19 = vpop.f32.mrb[0].mxu0 }
  0xdf   :  { %v110_v20 = vadd.f32 %v313_v18, %v109_v19  ;;  %v344_v21 = vpop.f32.mrb[1].mxu0 }
  0xe1   :  { %v113_v22 = vmax.f32 %v110_v20, 0.0 }
  0xe3   :  { %354 = vmatmul.mubr.msk.f32.vlgmr.msra.gmra.mrb[0].mxu1 %vm39_vm1, %v113_v22 }
 0x1b6   :  { %v194_v27 = vpop.f32.mrb[0].mxu1 }
 0x1b7   :  { %v195_v28 = vadd.f32 %v315_v26, %v194_v27  ;;  %v355_v29 = vpop.f32.mrb[1].mxu1 }
 0x1b9   :  { %v198_v30 = vmax.f32 %v195_v28, 0.0 }
 0x1bb   :  { %365 = vmatmul.mubr.msk.f32.vlgmr.msra.gmra.mrb[2].mxu0 %vm39_vm1, %v198_v30 }
 0x28e   :  { %v279_v32 = vpop.f32.mrb[2].mxu0 }
 0x28f   :  { %v280_v33 = vadd.f32 %v317_v31, %v279_v32  ;;  %v366_v34 = vpop.f32.mrb[3].mxu0 }
 0x291   :  { %v283_v35 = vmul.f32 %v280_v33, %v280_v33 }
 0x293   :  { %v285_v36 = vsel %vm284_vm2, %v283_v35, 0.0 }
 0x294   :  { %286 = vadd.xlane.f32.xlu0 %v285_v36 }
 0x321   :  { %v287_v37 = vpop.xlane.xlu0 %286 }
 0x322   :  { %389 = vrsqrt.f32 %v287_v37  ;;  %vm290_vm3 = vcmp.eq.f32.partialorder %v287_v37, inf  ;;  %v293_v40 = vand.u32 2147483648, %v287_v37  ;;  %vm292_vm4 = vcmp.eq.f32.partialorder %v287_v37, 0.0 }
 0x32c   :  { %v390_v38 = vpop.eup %389 }
 0x32d   :  { %v289_v39 = vmul.f32 %v390_v38, %v287_v37 }
 0x32f   :  { %v291_v41 = vsel %vm290_vm3, %v287_v37, %v289_v39 }
 0x330   :  { %v294_v42 = vsel %vm292_vm4, %v293_v40, %v291_v41 }
 0x331   :  { %v295_v43 = vmax.f32 %v294_v42, 1e-12 }
 0x333   :  { %391 = vrcp.f32 %v295_v43 }
 0x33d   :  { %v392_v44 = vpop.eup %391 }
 0x33e   :  { %v297_v45 = vmul.f32 %v392_v44, %v280_v33 }
 0x340   :  { %298 = vst.msk [vmem:[#allocation2] sm:$0x3] %vm284_vm2, %v297_v45 }
 0x341   :  { %404 = shalt.err (!%p401_p4)
}
 0x342   :  { %s405_s8 = scalar_lea.hbm %s536_s7, 32 }
 0x343   :  { %p406_p5 = scmp.ne.s32.totalorder %s536_s7, %s405_s8  ;;  %p409_p6 = scmp.lt.u32.totalorder %s405_s8, %s536_s7 }
 0x345   :  { %p411_p7 = pnand %p409_p6, %p406_p5 }
 0x347   :  { %414 = shalt.err (!%p411_p7)
}
 0x348   :  { %308 = dma.vmem_to_hbm [thread:$0]  %s306_s5, 32, %s536_s7, [#allocation3]  }
 0x349   :  { %415 = dma.done.wait [#allocation3], 32  }
 0x34a   :  { %416 = vsyncadd [#allocation3], 4294967264 }
 0x34b   :  { %312 = vsyncpa [#allocation3], 1 }

// kernel: style_encoder_forward.6
= control target key start
LH: loop header
LB: loop body
LE: loop exit
PB: predicated region body
PF: predicated region fallthrough
CT: control target
= control target key end

     0   :  { %s469_s12 = smov 0   ;;  %s526_s0 = inlined_call_operand.vmem [shape: bf16[2,16,144], index: 0, kind: input, shape index: {}]   ;;  %s527_s1 = inlined_call_operand.vmem [shape: bf16[144,32], index: 1, kind: input, shape index: {}]   ;;  %s528_s2 = inlined_call_operand.vmem [shape: f32[1,32], index: 2, kind: input, shape index: {}]   ;;  %s529_s3 = inlined_call_operand.vmem [shape: f32[2,1,32], index: 3, kind: output, shape index: {}]  }
   0x1 LB: > { %s394_s13 = sadd.s32 4294967295, %s446_s12   ;;  %p398_p0 = scmp.ge.s32.totalorder %s446_s12, 1  ;;  %s446_s12 = sphi %s469_s12, %s13_s12  }
   0x2   : > { %p137_p1 = scmp.lt.s32.totalorder %s446_s12, 3 }
   0x4   : > { %p138_p2 = pnand %p398_p0, %p137_p1 }
   0x5   : > { %v426_v0 = vld [vmem:[%s527_s1] sm:$0xff] (!%p138_p2)   ;;  %v448_v1 = vmov (!%p138_p2), 0   ;;  %p159_p3 = scmp.lt.s32.totalorder (!%p138_p2), %s394_s13, 1  ;;  %v427_v2 = vld [vmem:[%s527_s1 + $0x8] sm:$0xff] (!%p138_p2)   ;;  %v428_v3 = vld [vmem:[%s527_s1 + $0x10] sm:$0xff] (!%p138_p2)   ;;  %vm258_vm0 = vcmask (!%p138_p2), 130048  }
   0x6   : > { %141 = sbr.rel (%p138_p2) target bundleno = 331 (0x14b), region = 32  ;;  %262 = vmatprep.subr.bf16.mxu0 (!%p138_p2), %v448_v1  ;;  %v429_v4 = vld [vmem:[%s527_s1 + $0x18] sm:$0xff] (!%p138_p2)   ;;  %v430_v6 = vld [vmem:[%s527_s1 + $0x20] sm:$0xff] (!%p138_p2)   ;;  %v431_v7 = vld [vmem:[%s527_s1 + $0x28] sm:$0xff] (!%p138_p2)   ;;  %vm305_vm1 = vcmask (!%p138_p2), 261120   ;;  %vm345_vm2 = vcmask (!%p138_p2), 253952  }
   0x7   : > { %263 = vmatpush1.bf16.msra.mxu0 (!%p138_p2), %v426_v0  ;;  %v432_v8 = vld [vmem:[%s527_s1 + $0x30] sm:$0xff] (!%p138_p2)   ;;  %v433_v9 = vld [vmem:[%s527_s1 + $0x38] sm:$0xff] (!%p138_p2)   ;;  %v434_v10 = vld [vmem:[%s527_s1 + $0x40] sm:$0xff] (!%p138_p2)  }
   0x8   : > { %264 = vmatprep.subr.bf16.mxu0 (!%p138_p2), %v448_v1  ;;  %v401_v12 = vld [vmem:[%s528_s2] ss:$0 sm:$0xff] (!%p138_p2) }
   0xb   : > { %265 = vmatpush1.bf16.msra.mxu0 (!%p138_p2), %v427_v2 }
   0xc   : > { %266 = vmatprep.subr.bf16.mxu0 (!%p138_p2), %v448_v1 }
   0xd   : > { %s531_s13 = smov (!%p159_p3, %s394_s13), 1 }
   0xe   : > { %s416_s18 = sshll.u32 %s531_s13, 4  ;;  %s166_s15 = scalar_lea.vmem %s529_s3, %s531_s13 }
   0xf   : > { %s163_s23 = scalar_lea.vmem %s526_s0, %s416_s18  ;;  %267 = vmatpush1.bf16.msra.mxu0 %v428_v3 }
  0x10   : > { %v437_v5 = vld [vmem:[%s163_s23 + $0x4] ss:$8 sps:$4 sm:$0xff]   ;;  %268 = vmatprep.subr.bf16.mxu0 %v448_v1  ;;  %v435_v11 = vld [vmem:[%s163_s23] ss:$8 sps:$4 sm:$0xff]  }
  0x11   : > { %413 = vmatprep.mubr.msk.bf16.mxu0 %vm258_vm0, %v437_v5 }
  0x13   : > { %269 = vmatpush1.bf16.msra.mxu0 %v429_v4 }
  0x14   : > { %270 = vmatprep.subr.bf16.mxu0 %v448_v1 }
  0x17   : > { %271 = vmatpush1.bf16.msra.mxu0 %v430_v6 }
  0x18   : > { %272 = vmatprep.subr.bf16.mxu0 %v448_v1 }
  0x1b   : > { %273 = vmatpush1.bf16.msra.mxu0 %v431_v7 }
  0x1c   : > { %274 = vmatprep.subr.bf16.mxu0 %v448_v1 }
  0x1f   : > { %275 = vmatpush1.bf16.msra.mxu0 %v432_v8 }
  0x20   : > { %276 = vmatprep.subr.bf16.mxu0 %v448_v1 }
  0x23   : > { %277 = vmatpush1.bf16.msra.mxu0 %v433_v9 }
  0x24   : > { %278 = vmatprep.subr.bf16.mxu0 %v448_v1 }
  0x27   : > { %279 = vmatpush1.bf16.msra.mxu0 %v434_v10 }
  0x2a   : > { %295 = vmatmul.mubr.bf16.vlgmr.msra.gmra.mrb[0].mxu0 %v435_v11 }
  0xfd   : > { %v296_v13 = vpop.f32.mrb[0].mxu0 }
  0xfe   : > { %v297_v14 = vadd.f32 %v401_v12, %v296_v13  ;;  %v298_v15 = vpop.f32.mrb[1].mxu0 }
  0xff   : > { %v299_v16 = vpop.f32.mrb[2].mxu0 }
 0x100   : > { %v303_v17 = vmax.f32 %v297_v14, 0.0  ;;  %v300_v18 = vadd.f32 %v401_v12, %v299_v16  ;;  %v301_v19 = vpop.f32.mrb[3].mxu0 }
 0x102   : > { %v304_v20 = vmax.f32 %v300_v18, 0.0  ;;  %v306_v21 = vsel %vm305_vm1, %v303_v17, 0.0 }
 0x104   : > { %v307_v22 = vsel %vm305_vm1, %v304_v20, 0.0 }
 0x105   : > { %v308_v23 = vadd.f32 %v307_v22, %v306_v21 }
 0x107   : > { %v309_v24 = vrot.slane %v308_v23, 4 }
 0x109   : > { %v310_v25 = vadd.f32 %v309_v24, %v308_v23 }
 0x10b   : > { %v311_v26 = vrot.slane %v310_v25, 2 }
 0x10d   : > { %v312_v27 = vadd.f32 %v311_v26, %v310_v25 }
 0x10f   : > { %v313_v28 = vrot.slane %v312_v27, 1 }
 0x111   : > { %v314_v29 = vadd.f32 %v313_v28, %v312_v27 }
 0x113   : > { %v316_v30 = vmul.f32 0.0625, %v314_v29 }
 0x115   : > { %v317_v31 = vsub.f32 %v303_v17, %v316_v30  ;;  %v318_v32 = vsub.f32 %v304_v20, %v316_v30 }
 0x117   : > { %v319_v33 = vmul.f32 %v317_v31, %v317_v31  ;;  %v320_v34 = vmul.f32 %v318_v32, %v318_v32 }
 0x119   : > { %v321_v35 = vsel %vm305_vm1, %v319_v33, 0.0  ;;  %v322_v36 = vsel %vm305_vm1, %v320_v34, 0.0 }
 0x11a   : > { %v323_v37 = vadd.f32 %v322_v36, %v321_v35 }
 0x11c   : > { %v324_v38 = vrot.slane %v323_v37, 4 }
 0x11e   : > { %v325_v39 = vadd.f32 %v324_v38, %v323_v37 }
 0x120   : > { %v326_v40 = vrot.slane %v325_v39, 2 }
 0x122   : > { %v327_v41 = vadd.f32 %v326_v40, %v325_v39 }
 0x124   : > { %v328_v42 = vrot.slane %v327_v41, 1 }
 0x126   : > { %v329_v43 = vadd.f32 %v328_v42, %v327_v41 }
 0x128   : > { %v330_v44 = vmul.f32 0.0625, %v329_v43 }
 0x12a   : > { %v331_v45 = vadd.f32 1e-05, %v330_v44 }
 0x12c   : > { %438 = vrsqrt.f32 %v331_v45 }
 0x136   : > { %v439_v46 = vpop.eup %438 }
 0x137   : > { %v333_v47 = vmul.f32 %v439_v46, %v317_v31  ;;  %v334_v48 = vmul.f32 %v439_v46, %v318_v32 }
 0x139   : > { %v335_v49 = vsel %vm305_vm1, %v333_v47, 0.0  ;;  %v336_v50 = vsel %vm305_vm1, %v334_v48, 0.0 }
 0x13a   : > { %v337_v51 = vadd.f32 %v336_v50, %v335_v49 }
 0x13c   : > { %v338_v52 = vrot.slane %v337_v51, 4 }
 0x13e   : > { %v339_v53 = vadd.f32 %v338_v52, %v337_v51 }
 0x140   : > { %v340_v54 = vrot.slane %v339_v53, 2 }
 0x142   : > { %v341_v55 = vadd.f32 %v340_v54, %v339_v53 }
 0x144   : > { %v342_v56 = vrot.slane %v341_v55, 1 }
 0x146   : > { %v343_v57 = vadd.f32 %v342_v56, %v341_v55 }
 0x148   : > { %v344_v58 = vmul.f32 0.0625, %v343_v57 }
 0x14a   : > { %346 = vst.msk [vmem:[%s166_s15] sm:$0x1] %vm345_vm2, %v344_v58 }
 0x14b PF: > { %s13_s12 = sadd.s32 1, %s446_s12  }
 0x14c   : > { %p10_p4 = scmp.ge.s32.totalorder %s13_s12, 4  }
 0x14e   :  { %12 = sbr.rel (!%p10_p4) target bundleno = 1 (0x1), region = 62 }

</bundles_post_ra>
